<compile_context>
chip_gen: v7x
topology: tpu7x:2x2x1
jax: 0.10.0
libtpu: 0.0.40
codegen_flags: <defaults>
</compile_context>

<pallas_src>
import math
import jax
import jax.numpy as jnp
from jax.experimental import pallas as pl
from jax.experimental.pallas import tpu as pltpu

# Module hyper-parameters (from the script globals)
D = 128            # embed_size / inner_transformer_size
H = 8              # n_heads
DH = D // H        # per-head dim (16)
FF = 4 * D         # inner_ff_size (512)
EPS = 1e-5         # nn.LayerNorm default eps


def _layer_norm(x, g, b):
    mu = jnp.mean(x, axis=-1, keepdims=True)
    var = jnp.mean((x - mu) ** 2, axis=-1, keepdims=True)
    return (x - mu) * jax.lax.rsqrt(var + EPS) * g + b


def encoder_layer_kernel(x_ref,
                         g1_ref, b1_ref,
                         wqkv_ref, bqkv_ref,
                         wout_ref, bout_ref,
                         g2_ref, b2_ref,
                         w1_ref, bf1_ref,
                         w2_ref, bf2_ref,
                         o_ref):
    bt, s, d = x_ref.shape
    r = bt * s                                             # rows = batch*seq

    x = x_ref[...].reshape(r, d)                           # (R, D) f32

    # --- norm1 ---
    x2 = _layer_norm(x, g1_ref[0], b1_ref[0])
    x2b = x2.astype(jnp.bfloat16)

    # --- QKV projection (head-batched, transpose-free) ---
    # wqkv_ref is (3H, D, DH) bf16, head-major (q heads, then k, then v).
    x_rep = jnp.broadcast_to(x2b, (3 * H, r, d))           # cheap leading-dim bcast
    qkv = jnp.einsum('nrd,nde->nre', x_rep, wqkv_ref[...],
                     preferred_element_type=jnp.float32)
    qkv = qkv + bqkv_ref[...]                              # (3H, R, DH) f32

    def heads(t):                                          # (H, R, DH) -> (H*Bt, S, DH)
        return t.reshape(H * bt, s, DH).astype(jnp.bfloat16)

    q = heads(qkv[:H])
    k = heads(qkv[H:2 * H])
    v = heads(qkv[2 * H:])

    # --- attention core: dense over all (head, batch) pairs ---
    scale = 1.0 / math.sqrt(DH)                            # q.shape[-1] == DH
    scores = jnp.einsum('nqd,nkd->nqk', q, k,
                        preferred_element_type=jnp.float32) * scale   # (H*Bt, S, S)
    m = jnp.max(scores, axis=-1, keepdims=True)
    e = jnp.exp(scores - m)
    l = jnp.sum(e, axis=-1, keepdims=True)
    p = (e * pl.reciprocal(l, approx=True)).astype(jnp.bfloat16)

    pv = jnp.einsum('nqk,nkd->nqd', p, v,
                    preferred_element_type=jnp.float32)    # (H*Bt, S, DH)
    pvh = pv.reshape(H, r, DH)                             # head-major, rows = (b, s)

    # --- output projection with the head-concat folded in: sum_h o_h @ Wout_h ---
    wout = wout_ref[...]                                   # (H, DH, D) bf16
    attn = jnp.zeros((r, d), jnp.float32)
    for h in range(H):                                     # 8 aligned (R,16)x(16,D) matmuls
        attn = attn + jnp.dot(pvh[h].astype(jnp.bfloat16), wout[h],
                              preferred_element_type=jnp.float32)
    attn = attn + bout_ref[0]

    x = x + attn                                           # residual 1 (dropout1 = id)

    # --- norm2 + feed-forward ---
    x2b = _layer_norm(x, g2_ref[0], b2_ref[0]).astype(jnp.bfloat16)
    h1 = jnp.dot(x2b, w1_ref[...], preferred_element_type=jnp.float32) + bf1_ref[0]
    h1 = jnp.maximum(h1, 0.0).astype(jnp.bfloat16)
    ff = jnp.dot(h1, w2_ref[...], preferred_element_type=jnp.float32) + bf2_ref[0]

    o_ref[...] = (x + ff).reshape(bt, s, d)                # residual 2 (dropout2 = id)


def _prep_weights(params):
    """Host-side weight re-layout / bf16 cast (free, outside the kernel)."""
    wqkv = params["wqkv"]                                  # (D, 3D), cols = (which, head, dh)
    w_qkv_h = (wqkv.reshape(D, 3, H, DH)
                   .transpose(1, 2, 0, 3)                  # (which, head, in, dh)
                   .reshape(3 * H, D, DH)
                   .astype(jnp.bfloat16))
    b_qkv_h = params["bqkv"].reshape(3, H, DH).reshape(3 * H, 1, DH)   # f32
    wout_h = params["wout"].reshape(H, DH, D).astype(jnp.bfloat16)
    return [
        params["g1"], params["b1"],
        w_qkv_h, b_qkv_h,
        wout_h, params["bout"],
        params["g2"], params["b2"],
        params["w1"].astype(jnp.bfloat16), params["bf1"],
        params["w2"].astype(jnp.bfloat16), params["bf2"],
    ]


def _choose_batch_tile(B, S, target_rows=512):
    """Biggest batch tile with Bt*S ~ target rows, keeping >=2 grid steps."""
    bt = max(1, min(B, max(1, target_rows // S)))
    if B >= 2:
        bt = min(bt, B // 2)            # >=2 parallel steps feeds both v7x TCs
    bt = max(bt, 1)
    while B % bt:                       # keep the grid exact (no partial blocks)
        bt -= 1
    return bt


def encoder_layer(x, params):
    B, S, d = x.shape
    assert d == D
    bt = _choose_batch_tile(B, S)
    grid = (B // bt,)

    weights = _prep_weights(params)

    def full_spec(arr):
        rank = arr.ndim
        return pl.BlockSpec(arr.shape, lambda b, _r=rank: (0,) * _r)

    in_specs = [pl.BlockSpec((bt, S, D), lambda b: (b, 0, 0))]
    in_specs += [full_spec(w) for w in weights]

    return pl.pallas_call(
        encoder_layer_kernel,
        out_shape=jax.ShapeDtypeStruct((B, S, D), jnp.float32),
        grid_spec=pltpu.PrefetchScalarGridSpec(
            num_scalar_prefetch=0,
            grid=grid,
            in_specs=in_specs,
            out_specs=pl.BlockSpec((bt, S, D), lambda b: (b, 0, 0)),
        ),
        compiler_params=pltpu.CompilerParams(
            dimension_semantics=("parallel",),
            vmem_limit_bytes=32 * 1024 * 1024,
        ),
    )(x, *weights)


def reference(x, p):
    """Pure-JAX f32 reference mirroring the PyTorch forward (eval mode, mask=None)."""
    def ln(t, g, b):
        mu = t.mean(-1, keepdims=True)
        var = ((t - mu) ** 2).mean(-1, keepdims=True)
        return (t - mu) / jnp.sqrt(var + EPS) * g + b

    B, S, _ = x.shape
    x2 = ln(x, p["g1"][0], p["b1"][0])
    qkv = x2 @ p["wqkv"] + p["bqkv"][0]
    q, k, v = qkv[..., :D], qkv[..., D:2 * D], qkv[..., 2 * D:]

    def split(t):
        return t.reshape(B, S, H, DH).transpose(0, 2, 1, 3)

    q, k, v = split(q), split(k), split(v)
    s = (q @ jnp.swapaxes(k, -2, -1)) / math.sqrt(DH)
    a = jax.nn.softmax(s, axis=-1)
    o = (a @ v).transpose(0, 2, 1, 3).reshape(B, S, D)
    o = o @ p["wout"] + p["bout"][0]
    x = x + o
    x2 = ln(x, p["g2"][0], p["b2"][0])
    ff = jnp.maximum(x2 @ p["w1"] + p["bf1"][0], 0.0) @ p["w2"] + p["bf2"][0]
    return x + ff


def init_params(key):
    ks = jax.random.split(key, 8)
    scale = 0.02
    return {
        "g1":   jnp.ones((1, D), jnp.float32),
        "b1":   jnp.zeros((1, D), jnp.float32),
        "wqkv": scale * jax.random.normal(ks[0], (D, 3 * D), jnp.float32),
        "bqkv": scale * jax.random.normal(ks[1], (1, 3 * D), jnp.float32),
        "wout": scale * jax.random.normal(ks[2], (D, D), jnp.float32),
        "bout": scale * jax.random.normal(ks[3], (1, D), jnp.float32),
        "g2":   jnp.ones((1, D), jnp.float32),
        "b2":   jnp.zeros((1, D), jnp.float32),
        "w1":   scale * jax.random.normal(ks[4], (D, FF), jnp.float32),
        "bf1":  scale * jax.random.normal(ks[5], (1, FF), jnp.float32),
        "w2":   scale * jax.random.normal(ks[6], (FF, D), jnp.float32),
        "bf2":  scale * jax.random.normal(ks[7], (1, D), jnp.float32),
    }


if __name__ == "__main__":
    key = jax.random.PRNGKey(0)
    k_x, k_p = jax.random.split(key)

    B, S = 2, 8
    x = jax.random.normal(k_x, (B, S, D), jnp.float32)
    params = init_params(k_p)

    out = jax.block_until_ready(encoder_layer(x, params))
    ref = reference(x, params)

    assert out.shape == (B, S, D)
    # bf16 MXU operands + approx reciprocal -> loosened tolerance vs f32 reference
    assert jnp.allclose(out, ref, rtol=2e-2, atol=2e-2), "mismatch vs reference"

    print("KERNEL_OK")
</pallas_src>

<mosaic_0001>
module attributes {stable_mosaic.version = 11 : i64} {
  func.func @encoder_layer_kernel(%arg0: i32, %arg1: memref<1x8x128xf32, #tpu.memory_space<vmem>>, %arg2: memref<1x128xf32, #tpu.memory_space<vmem>>, %arg3: memref<1x128xf32, #tpu.memory_space<vmem>>, %arg4: memref<24x128x16xbf16, #tpu.memory_space<vmem>>, %arg5: memref<24x1x16xf32, #tpu.memory_space<vmem>>, %arg6: memref<8x16x128xbf16, #tpu.memory_space<vmem>>, %arg7: memref<1x128xf32, #tpu.memory_space<vmem>>, %arg8: memref<1x128xf32, #tpu.memory_space<vmem>>, %arg9: memref<1x128xf32, #tpu.memory_space<vmem>>, %arg10: memref<128x512xbf16, #tpu.memory_space<vmem>>, %arg11: memref<1x512xf32, #tpu.memory_space<vmem>>, %arg12: memref<512x128xbf16, #tpu.memory_space<vmem>>, %arg13: memref<1x128xf32, #tpu.memory_space<vmem>>, %arg14: memref<1x8x128xf32, #tpu.memory_space<vmem>>) attributes {dimension_semantics = [#tpu.dimension_semantics<parallel>], iteration_bounds = array<i64: 2>, scalar_prefetch = 0 : i64, scratch_operands = 0 : i64, tpu.core_type = #tpu.core_type<tc>, window_params = [{transform_indices = @transform_0, window_bounds = array<i64: 1, 8, 128>}, {pipeline_mode = #tpu.pipeline_mode<synchronous>, transform_indices = @transform_1, window_bounds = array<i64: 1, 128>}, {pipeline_mode = #tpu.pipeline_mode<synchronous>, transform_indices = @transform_2, window_bounds = array<i64: 1, 128>}, {pipeline_mode = #tpu.pipeline_mode<synchronous>, transform_indices = @transform_3, window_bounds = array<i64: 24, 128, 16>}, {pipeline_mode = #tpu.pipeline_mode<synchronous>, transform_indices = @transform_4, window_bounds = array<i64: 24, 1, 16>}, {pipeline_mode = #tpu.pipeline_mode<synchronous>, transform_indices = @transform_5, window_bounds = array<i64: 8, 16, 128>}, {pipeline_mode = #tpu.pipeline_mode<synchronous>, transform_indices = @transform_6, window_bounds = array<i64: 1, 128>}, {pipeline_mode = #tpu.pipeline_mode<synchronous>, transform_indices = @transform_7, window_bounds = array<i64: 1, 128>}, {pipeline_mode = #tpu.pipeline_mode<synchronous>, transform_indices = @transform_8, window_bounds = array<i64: 1, 128>}, {pipeline_mode = #tpu.pipeline_mode<synchronous>, transform_indices = @transform_9, window_bounds = array<i64: 128, 512>}, {pipeline_mode = #tpu.pipeline_mode<synchronous>, transform_indices = @transform_10, window_bounds = array<i64: 1, 512>}, {pipeline_mode = #tpu.pipeline_mode<synchronous>, transform_indices = @transform_11, window_bounds = array<i64: 512, 128>}, {pipeline_mode = #tpu.pipeline_mode<synchronous>, transform_indices = @transform_12, window_bounds = array<i64: 1, 128>}, {transform_indices = @transform_13, window_bounds = array<i64: 1, 8, 128>}]} {
    %c0 = arith.constant 0 : index
    %c0_0 = arith.constant 0 : index
    %c0_1 = arith.constant 0 : index
    %0 = vector.load %arg1[%c0, %c0_0, %c0_1] : memref<1x8x128xf32, #tpu.memory_space<vmem>>, vector<1x8x128xf32>
    %1 = vector.shape_cast %0 : vector<1x8x128xf32> to vector<8x128xf32>
    %c0_2 = arith.constant 0 : index
    %c0_3 = arith.constant 0 : index
    %2 = vector.load %arg2[%c0_2, %c0_3] : memref<1x128xf32, #tpu.memory_space<vmem>>, vector<1x128xf32>
    %3 = vector.shape_cast %2 : vector<1x128xf32> to vector<128xf32>
    %c0_4 = arith.constant 0 : index
    %c0_5 = arith.constant 0 : index
    %4 = vector.load %arg3[%c0_4, %c0_5] : memref<1x128xf32, #tpu.memory_space<vmem>>, vector<1x128xf32>
    %5 = vector.shape_cast %4 : vector<1x128xf32> to vector<128xf32>
    %cst = arith.constant dense<0.000000e+00> : vector<8xf32>
    %6 = vector.multi_reduction <add>, %1, %cst [1] : vector<8x128xf32> to vector<8xf32>
    %7 = vector.shape_cast %6 : vector<8xf32> to vector<8x1xf32>
    %cst_6 = arith.constant 1.280000e+02 : f32
    %8 = vector.broadcast %cst_6 : f32 to vector<8x1xf32>
    %9 = arith.divf %7, %8 : vector<8x1xf32>
    %10 = vector.broadcast %9 : vector<8x1xf32> to vector<8x128xf32>
    %11 = arith.subf %1, %10 : vector<8x128xf32>
    %12 = arith.mulf %11, %11 : vector<8x128xf32>
    %cst_7 = arith.constant dense<0.000000e+00> : vector<8xf32>
    %13 = vector.multi_reduction <add>, %12, %cst_7 [1] : vector<8x128xf32> to vector<8xf32>
    %14 = vector.shape_cast %13 : vector<8xf32> to vector<8x1xf32>
    %cst_8 = arith.constant 1.280000e+02 : f32
    %15 = vector.broadcast %cst_8 : f32 to vector<8x1xf32>
    %16 = arith.divf %14, %15 : vector<8x1xf32>
    %17 = vector.broadcast %9 : vector<8x1xf32> to vector<8x128xf32>
    %18 = arith.subf %1, %17 : vector<8x128xf32>
    %cst_9 = arith.constant 9.99999974E-6 : f32
    %19 = vector.broadcast %cst_9 : f32 to vector<8x1xf32>
    %20 = arith.addf %16, %19 : vector<8x1xf32>
    %21 = math.rsqrt %20 : vector<8x1xf32>
    %22 = vector.broadcast %21 : vector<8x1xf32> to vector<8x128xf32>
    %23 = arith.mulf %18, %22 : vector<8x128xf32>
    %24 = vector.shape_cast %3 : vector<128xf32> to vector<1x128xf32>
    %25 = vector.broadcast %24 : vector<1x128xf32> to vector<8x128xf32>
    %26 = arith.mulf %23, %25 : vector<8x128xf32>
    %27 = vector.shape_cast %5 : vector<128xf32> to vector<1x128xf32>
    %28 = vector.broadcast %27 : vector<1x128xf32> to vector<8x128xf32>
    %29 = arith.addf %26, %28 : vector<8x128xf32>
    %30 = arith.truncf %29 : vector<8x128xf32> to vector<8x128xbf16>
    %31 = vector.shape_cast %30 : vector<8x128xbf16> to vector<1x8x128xbf16>
    %32 = vector.broadcast %31 : vector<1x8x128xbf16> to vector<24x8x128xbf16>
    %c0_10 = arith.constant 0 : index
    %c0_11 = arith.constant 0 : index
    %c0_12 = arith.constant 0 : index
    %33 = vector.load %arg4[%c0_10, %c0_11, %c0_12] : memref<24x128x16xbf16, #tpu.memory_space<vmem>>, vector<24x128x16xbf16>
    "tpu.trace_start"() <{level = 10 : i32, message = "nrd,nde->nre"}> : () -> ()
    %cst_13 = arith.constant dense<0.000000e+00> : vector<24x8x16xf32>
    %34 = tpu.matmul %32, %33, %cst_13 {dimension_numbers = #tpu.dot_dimension_numbers<[2], [1], [1], [2], [0, 0, 0, 1, 1, 2], [0], [0]>} : vector<24x8x128xbf16>, vector<24x128x16xbf16>, vector<24x8x16xf32> -> vector<24x8x16xf32>
    "tpu.trace_stop"() : () -> ()
    %c0_14 = arith.constant 0 : index
    %c0_15 = arith.constant 0 : index
    %c0_16 = arith.constant 0 : index
    %35 = vector.load %arg5[%c0_14, %c0_15, %c0_16] : memref<24x1x16xf32, #tpu.memory_space<vmem>>, vector<24x1x16xf32>
    %36 = vector.broadcast %35 : vector<24x1x16xf32> to vector<24x8x16xf32>
    %37 = arith.addf %34, %36 : vector<24x8x16xf32>
    %38 = vector.extract_strided_slice %37 {offsets = [0, 0, 0], sizes = [8, 8, 16], strides = [1, 1, 1]} : vector<24x8x16xf32> to vector<8x8x16xf32>
    %39 = arith.truncf %38 : vector<8x8x16xf32> to vector<8x8x16xbf16>
    %40 = vector.extract_strided_slice %37 {offsets = [8, 0, 0], sizes = [8, 8, 16], strides = [1, 1, 1]} : vector<24x8x16xf32> to vector<8x8x16xf32>
    %41 = arith.truncf %40 : vector<8x8x16xf32> to vector<8x8x16xbf16>
    %42 = vector.extract_strided_slice %37 {offsets = [16, 0, 0], sizes = [8, 8, 16], strides = [1, 1, 1]} : vector<24x8x16xf32> to vector<8x8x16xf32>
    %43 = arith.truncf %42 : vector<8x8x16xf32> to vector<8x8x16xbf16>
    "tpu.trace_start"() <{level = 10 : i32, message = "nqd,nkd->nqk"}> : () -> ()
    %cst_17 = arith.constant dense<0.000000e+00> : vector<8x8x8xf32>
    %44 = tpu.matmul %39, %41, %cst_17 {dimension_numbers = #tpu.dot_dimension_numbers<[2], [2], [1], [1], [0, 0, 0, 1, 1, 1], [0], [0]>} : vector<8x8x16xbf16>, vector<8x8x16xbf16>, vector<8x8x8xf32> -> vector<8x8x8xf32>
    "tpu.trace_stop"() : () -> ()
    %cst_18 = arith.constant 2.500000e-01 : f32
    %45 = vector.broadcast %cst_18 : f32 to vector<8x8x8xf32>
    %46 = arith.mulf %44, %45 : vector<8x8x8xf32>
    %cst_19 = arith.constant dense<0xFF800000> : vector<8x8xf32>
    %47 = vector.multi_reduction <maximumf>, %46, %cst_19 [2] : vector<8x8x8xf32> to vector<8x8xf32>
    %48 = vector.shape_cast %47 : vector<8x8xf32> to vector<8x8x1xf32>
    %49 = vector.broadcast %48 : vector<8x8x1xf32> to vector<8x8x8xf32>
    %50 = arith.subf %46, %49 : vector<8x8x8xf32>
    %51 = math.exp %50 : vector<8x8x8xf32>
    %cst_20 = arith.constant dense<0.000000e+00> : vector<8x8xf32>
    %52 = vector.multi_reduction <add>, %51, %cst_20 [2] : vector<8x8x8xf32> to vector<8x8xf32>
    %53 = vector.shape_cast %52 : vector<8x8xf32> to vector<8x8x1xf32>
    %54 = tpu.reciprocal %53 {approx = true} : vector<8x8x1xf32> -> vector<8x8x1xf32>
    %55 = vector.broadcast %54 : vector<8x8x1xf32> to vector<8x8x8xf32>
    %56 = arith.mulf %51, %55 : vector<8x8x8xf32>
    %57 = arith.truncf %56 : vector<8x8x8xf32> to vector<8x8x8xbf16>
    "tpu.trace_start"() <{level = 10 : i32, message = "nqk,nkd->nqd"}> : () -> ()
    %cst_21 = arith.constant dense<0.000000e+00> : vector<8x8x16xf32>
    %58 = tpu.matmul %57, %43, %cst_21 {dimension_numbers = #tpu.dot_dimension_numbers<[2], [1], [1], [2], [0, 0, 0, 1, 1, 2], [0], [0]>} : vector<8x8x8xbf16>, vector<8x8x16xbf16>, vector<8x8x16xf32> -> vector<8x8x16xf32>
    "tpu.trace_stop"() : () -> ()
    %c0_22 = arith.constant 0 : index
    %c0_23 = arith.constant 0 : index
    %c0_24 = arith.constant 0 : index
    %59 = vector.load %arg6[%c0_22, %c0_23, %c0_24] : memref<8x16x128xbf16, #tpu.memory_space<vmem>>, vector<8x16x128xbf16>
    %cst_25 = arith.constant 0.000000e+00 : f32
    %60 = vector.broadcast %cst_25 : f32 to vector<8x128xf32>
    %61 = vector.extract_strided_slice %58 {offsets = [0, 0, 0], sizes = [1, 8, 16], strides = [1, 1, 1]} : vector<8x8x16xf32> to vector<1x8x16xf32>
    %62 = vector.shape_cast %61 : vector<1x8x16xf32> to vector<8x16xf32>
    %63 = arith.truncf %62 : vector<8x16xf32> to vector<8x16xbf16>
    %64 = vector.extract_strided_slice %59 {offsets = [0, 0, 0], sizes = [1, 16, 128], strides = [1, 1, 1]} : vector<8x16x128xbf16> to vector<1x16x128xbf16>
    %65 = vector.shape_cast %64 : vector<1x16x128xbf16> to vector<16x128xbf16>
    %cst_26 = arith.constant dense<0.000000e+00> : vector<8x128xf32>
    %66 = tpu.matmul %63, %65, %cst_26 {dimension_numbers = #tpu.dot_dimension_numbers<[1], [0], [0], [1], [0, 0, 1, 1], [], []>} : vector<8x16xbf16>, vector<16x128xbf16>, vector<8x128xf32> -> vector<8x128xf32>
    %67 = arith.addf %60, %66 : vector<8x128xf32>
    %68 = vector.extract_strided_slice %58 {offsets = [1, 0, 0], sizes = [1, 8, 16], strides = [1, 1, 1]} : vector<8x8x16xf32> to vector<1x8x16xf32>
    %69 = vector.shape_cast %68 : vector<1x8x16xf32> to vector<8x16xf32>
    %70 = arith.truncf %69 : vector<8x16xf32> to vector<8x16xbf16>
    %71 = vector.extract_strided_slice %59 {offsets = [1, 0, 0], sizes = [1, 16, 128], strides = [1, 1, 1]} : vector<8x16x128xbf16> to vector<1x16x128xbf16>
    %72 = vector.shape_cast %71 : vector<1x16x128xbf16> to vector<16x128xbf16>
    %cst_27 = arith.constant dense<0.000000e+00> : vector<8x128xf32>
    %73 = tpu.matmul %70, %72, %cst_27 {dimension_numbers = #tpu.dot_dimension_numbers<[1], [0], [0], [1], [0, 0, 1, 1], [], []>} : vector<8x16xbf16>, vector<16x128xbf16>, vector<8x128xf32> -> vector<8x128xf32>
    %74 = arith.addf %67, %73 : vector<8x128xf32>
    %75 = vector.extract_strided_slice %58 {offsets = [2, 0, 0], sizes = [1, 8, 16], strides = [1, 1, 1]} : vector<8x8x16xf32> to vector<1x8x16xf32>
    %76 = vector.shape_cast %75 : vector<1x8x16xf32> to vector<8x16xf32>
    %77 = arith.truncf %76 : vector<8x16xf32> to vector<8x16xbf16>
    %78 = vector.extract_strided_slice %59 {offsets = [2, 0, 0], sizes = [1, 16, 128], strides = [1, 1, 1]} : vector<8x16x128xbf16> to vector<1x16x128xbf16>
    %79 = vector.shape_cast %78 : vector<1x16x128xbf16> to vector<16x128xbf16>
    %cst_28 = arith.constant dense<0.000000e+00> : vector<8x128xf32>
    %80 = tpu.matmul %77, %79, %cst_28 {dimension_numbers = #tpu.dot_dimension_numbers<[1], [0], [0], [1], [0, 0, 1, 1], [], []>} : vector<8x16xbf16>, vector<16x128xbf16>, vector<8x128xf32> -> vector<8x128xf32>
    %81 = arith.addf %74, %80 : vector<8x128xf32>
    %82 = vector.extract_strided_slice %58 {offsets = [3, 0, 0], sizes = [1, 8, 16], strides = [1, 1, 1]} : vector<8x8x16xf32> to vector<1x8x16xf32>
    %83 = vector.shape_cast %82 : vector<1x8x16xf32> to vector<8x16xf32>
    %84 = arith.truncf %83 : vector<8x16xf32> to vector<8x16xbf16>
    %85 = vector.extract_strided_slice %59 {offsets = [3, 0, 0], sizes = [1, 16, 128], strides = [1, 1, 1]} : vector<8x16x128xbf16> to vector<1x16x128xbf16>
    %86 = vector.shape_cast %85 : vector<1x16x128xbf16> to vector<16x128xbf16>
    %cst_29 = arith.constant dense<0.000000e+00> : vector<8x128xf32>
    %87 = tpu.matmul %84, %86, %cst_29 {dimension_numbers = #tpu.dot_dimension_numbers<[1], [0], [0], [1], [0, 0, 1, 1], [], []>} : vector<8x16xbf16>, vector<16x128xbf16>, vector<8x128xf32> -> vector<8x128xf32>
    %88 = arith.addf %81, %87 : vector<8x128xf32>
    %89 = vector.extract_strided_slice %58 {offsets = [4, 0, 0], sizes = [1, 8, 16], strides = [1, 1, 1]} : vector<8x8x16xf32> to vector<1x8x16xf32>
    %90 = vector.shape_cast %89 : vector<1x8x16xf32> to vector<8x16xf32>
    %91 = arith.truncf %90 : vector<8x16xf32> to vector<8x16xbf16>
    %92 = vector.extract_strided_slice %59 {offsets = [4, 0, 0], sizes = [1, 16, 128], strides = [1, 1, 1]} : vector<8x16x128xbf16> to vector<1x16x128xbf16>
    %93 = vector.shape_cast %92 : vector<1x16x128xbf16> to vector<16x128xbf16>
    %cst_30 = arith.constant dense<0.000000e+00> : vector<8x128xf32>
    %94 = tpu.matmul %91, %93, %cst_30 {dimension_numbers = #tpu.dot_dimension_numbers<[1], [0], [0], [1], [0, 0, 1, 1], [], []>} : vector<8x16xbf16>, vector<16x128xbf16>, vector<8x128xf32> -> vector<8x128xf32>
    %95 = arith.addf %88, %94 : vector<8x128xf32>
    %96 = vector.extract_strided_slice %58 {offsets = [5, 0, 0], sizes = [1, 8, 16], strides = [1, 1, 1]} : vector<8x8x16xf32> to vector<1x8x16xf32>
    %97 = vector.shape_cast %96 : vector<1x8x16xf32> to vector<8x16xf32>
    %98 = arith.truncf %97 : vector<8x16xf32> to vector<8x16xbf16>
    %99 = vector.extract_strided_slice %59 {offsets = [5, 0, 0], sizes = [1, 16, 128], strides = [1, 1, 1]} : vector<8x16x128xbf16> to vector<1x16x128xbf16>
    %100 = vector.shape_cast %99 : vector<1x16x128xbf16> to vector<16x128xbf16>
    %cst_31 = arith.constant dense<0.000000e+00> : vector<8x128xf32>
    %101 = tpu.matmul %98, %100, %cst_31 {dimension_numbers = #tpu.dot_dimension_numbers<[1], [0], [0], [1], [0, 0, 1, 1], [], []>} : vector<8x16xbf16>, vector<16x128xbf16>, vector<8x128xf32> -> vector<8x128xf32>
    %102 = arith.addf %95, %101 : vector<8x128xf32>
    %103 = vector.extract_strided_slice %58 {offsets = [6, 0, 0], sizes = [1, 8, 16], strides = [1, 1, 1]} : vector<8x8x16xf32> to vector<1x8x16xf32>
    %104 = vector.shape_cast %103 : vector<1x8x16xf32> to vector<8x16xf32>
    %105 = arith.truncf %104 : vector<8x16xf32> to vector<8x16xbf16>
    %106 = vector.extract_strided_slice %59 {offsets = [6, 0, 0], sizes = [1, 16, 128], strides = [1, 1, 1]} : vector<8x16x128xbf16> to vector<1x16x128xbf16>
    %107 = vector.shape_cast %106 : vector<1x16x128xbf16> to vector<16x128xbf16>
    %cst_32 = arith.constant dense<0.000000e+00> : vector<8x128xf32>
    %108 = tpu.matmul %105, %107, %cst_32 {dimension_numbers = #tpu.dot_dimension_numbers<[1], [0], [0], [1], [0, 0, 1, 1], [], []>} : vector<8x16xbf16>, vector<16x128xbf16>, vector<8x128xf32> -> vector<8x128xf32>
    %109 = arith.addf %102, %108 : vector<8x128xf32>
    %110 = vector.extract_strided_slice %58 {offsets = [7, 0, 0], sizes = [1, 8, 16], strides = [1, 1, 1]} : vector<8x8x16xf32> to vector<1x8x16xf32>
    %111 = vector.shape_cast %110 : vector<1x8x16xf32> to vector<8x16xf32>
    %112 = arith.truncf %111 : vector<8x16xf32> to vector<8x16xbf16>
    %113 = vector.extract_strided_slice %59 {offsets = [7, 0, 0], sizes = [1, 16, 128], strides = [1, 1, 1]} : vector<8x16x128xbf16> to vector<1x16x128xbf16>
    %114 = vector.shape_cast %113 : vector<1x16x128xbf16> to vector<16x128xbf16>
    %cst_33 = arith.constant dense<0.000000e+00> : vector<8x128xf32>
    %115 = tpu.matmul %112, %114, %cst_33 {dimension_numbers = #tpu.dot_dimension_numbers<[1], [0], [0], [1], [0, 0, 1, 1], [], []>} : vector<8x16xbf16>, vector<16x128xbf16>, vector<8x128xf32> -> vector<8x128xf32>
    %116 = arith.addf %109, %115 : vector<8x128xf32>
    %c0_34 = arith.constant 0 : index
    %c0_35 = arith.constant 0 : index
    %117 = vector.load %arg7[%c0_34, %c0_35] : memref<1x128xf32, #tpu.memory_space<vmem>>, vector<1x128xf32>
    %118 = vector.shape_cast %117 : vector<1x128xf32> to vector<128xf32>
    %119 = vector.shape_cast %118 : vector<128xf32> to vector<1x128xf32>
    %120 = vector.broadcast %119 : vector<1x128xf32> to vector<8x128xf32>
    %121 = arith.addf %116, %120 : vector<8x128xf32>
    %122 = arith.addf %1, %121 : vector<8x128xf32>
    %c0_36 = arith.constant 0 : index
    %c0_37 = arith.constant 0 : index
    %123 = vector.load %arg8[%c0_36, %c0_37] : memref<1x128xf32, #tpu.memory_space<vmem>>, vector<1x128xf32>
    %124 = vector.shape_cast %123 : vector<1x128xf32> to vector<128xf32>
    %c0_38 = arith.constant 0 : index
    %c0_39 = arith.constant 0 : index
    %125 = vector.load %arg9[%c0_38, %c0_39] : memref<1x128xf32, #tpu.memory_space<vmem>>, vector<1x128xf32>
    %126 = vector.shape_cast %125 : vector<1x128xf32> to vector<128xf32>
    %cst_40 = arith.constant dense<0.000000e+00> : vector<8xf32>
    %127 = vector.multi_reduction <add>, %122, %cst_40 [1] : vector<8x128xf32> to vector<8xf32>
    %128 = vector.shape_cast %127 : vector<8xf32> to vector<8x1xf32>
    %cst_41 = arith.constant 1.280000e+02 : f32
    %129 = vector.broadcast %cst_41 : f32 to vector<8x1xf32>
    %130 = arith.divf %128, %129 : vector<8x1xf32>
    %131 = vector.broadcast %130 : vector<8x1xf32> to vector<8x128xf32>
    %132 = arith.subf %122, %131 : vector<8x128xf32>
    %133 = arith.mulf %132, %132 : vector<8x128xf32>
    %cst_42 = arith.constant dense<0.000000e+00> : vector<8xf32>
    %134 = vector.multi_reduction <add>, %133, %cst_42 [1] : vector<8x128xf32> to vector<8xf32>
    %135 = vector.shape_cast %134 : vector<8xf32> to vector<8x1xf32>
    %cst_43 = arith.constant 1.280000e+02 : f32
    %136 = vector.broadcast %cst_43 : f32 to vector<8x1xf32>
    %137 = arith.divf %135, %136 : vector<8x1xf32>
    %138 = vector.broadcast %130 : vector<8x1xf32> to vector<8x128xf32>
    %139 = arith.subf %122, %138 : vector<8x128xf32>
    %cst_44 = arith.constant 9.99999974E-6 : f32
    %140 = vector.broadcast %cst_44 : f32 to vector<8x1xf32>
    %141 = arith.addf %137, %140 : vector<8x1xf32>
    %142 = math.rsqrt %141 : vector<8x1xf32>
    %143 = vector.broadcast %142 : vector<8x1xf32> to vector<8x128xf32>
    %144 = arith.mulf %139, %143 : vector<8x128xf32>
    %145 = vector.shape_cast %124 : vector<128xf32> to vector<1x128xf32>
    %146 = vector.broadcast %145 : vector<1x128xf32> to vector<8x128xf32>
    %147 = arith.mulf %144, %146 : vector<8x128xf32>
    %148 = vector.shape_cast %126 : vector<128xf32> to vector<1x128xf32>
    %149 = vector.broadcast %148 : vector<1x128xf32> to vector<8x128xf32>
    %150 = arith.addf %147, %149 : vector<8x128xf32>
    %151 = arith.truncf %150 : vector<8x128xf32> to vector<8x128xbf16>
    %c0_45 = arith.constant 0 : index
    %c0_46 = arith.constant 0 : index
    %152 = vector.load %arg10[%c0_45, %c0_46] : memref<128x512xbf16, #tpu.memory_space<vmem>>, vector<128x512xbf16>
    %cst_47 = arith.constant dense<0.000000e+00> : vector<8x512xf32>
    %153 = tpu.matmul %151, %152, %cst_47 {dimension_numbers = #tpu.dot_dimension_numbers<[1], [0], [0], [1], [0, 0, 1, 1], [], []>} : vector<8x128xbf16>, vector<128x512xbf16>, vector<8x512xf32> -> vector<8x512xf32>
    %c0_48 = arith.constant 0 : index
    %c0_49 = arith.constant 0 : index
    %154 = vector.load %arg11[%c0_48, %c0_49] : memref<1x512xf32, #tpu.memory_space<vmem>>, vector<1x512xf32>
    %155 = vector.shape_cast %154 : vector<1x512xf32> to vector<512xf32>
    %156 = vector.shape_cast %155 : vector<512xf32> to vector<1x512xf32>
    %157 = vector.broadcast %156 : vector<1x512xf32> to vector<8x512xf32>
    %158 = arith.addf %153, %157 : vector<8x512xf32>
    %cst_50 = arith.constant 0.000000e+00 : f32
    %159 = vector.broadcast %cst_50 : f32 to vector<8x512xf32>
    %160 = arith.maximumf %158, %159 : vector<8x512xf32>
    %161 = arith.truncf %160 : vector<8x512xf32> to vector<8x512xbf16>
    %c0_51 = arith.constant 0 : index
    %c0_52 = arith.constant 0 : index
    %162 = vector.load %arg12[%c0_51, %c0_52] : memref<512x128xbf16, #tpu.memory_space<vmem>>, vector<512x128xbf16>
    %cst_53 = arith.constant dense<0.000000e+00> : vector<8x128xf32>
    %163 = tpu.matmul %161, %162, %cst_53 {dimension_numbers = #tpu.dot_dimension_numbers<[1], [0], [0], [1], [0, 0, 1, 1], [], []>} : vector<8x512xbf16>, vector<512x128xbf16>, vector<8x128xf32> -> vector<8x128xf32>
    %c0_54 = arith.constant 0 : index
    %c0_55 = arith.constant 0 : index
    %164 = vector.load %arg13[%c0_54, %c0_55] : memref<1x128xf32, #tpu.memory_space<vmem>>, vector<1x128xf32>
    %165 = vector.shape_cast %164 : vector<1x128xf32> to vector<128xf32>
    %166 = vector.shape_cast %165 : vector<128xf32> to vector<1x128xf32>
    %167 = vector.broadcast %166 : vector<1x128xf32> to vector<8x128xf32>
    %168 = arith.addf %163, %167 : vector<8x128xf32>
    %169 = arith.addf %122, %168 : vector<8x128xf32>
    %170 = vector.shape_cast %169 : vector<8x128xf32> to vector<1x8x128xf32>
    %c0_56 = arith.constant 0 : index
    %c0_57 = arith.constant 0 : index
    %c0_58 = arith.constant 0 : index
    %171 = vector.load %arg14[%c0_56, %c0_57, %c0_58] : memref<1x8x128xf32, #tpu.memory_space<vmem>>, vector<1x8x128xf32>
    tpu.vector_store %arg14[%c0_56, %c0_57, %c0_58], %170 {strides = array<i32>} : memref<1x8x128xf32, #tpu.memory_space<vmem>>, vector<1x8x128xf32>,
    return
  }
  func.func @transform_0(%arg0: i32) -> (i32, i32, i32) {
    %c0_i32 = arith.constant 0 : i32
    %c0_i32_0 = arith.constant 0 : i32
    %c0_i32_1 = arith.constant 0 : i32
    return %arg0, %c0_i32, %c0_i32_0 : i32, i32, i32
  }
  func.func @transform_1(%arg0: i32) -> (i32, i32) {
    %c0_i32 = arith.constant 0 : i32
    %c0_i32_0 = arith.constant 0 : i32
    %c0_i32_1 = arith.constant 0 : i32
    return %c0_i32, %c0_i32_0 : i32, i32
  }
  func.func @transform_2(%arg0: i32) -> (i32, i32) {
    %c0_i32 = arith.constant 0 : i32
    %c0_i32_0 = arith.constant 0 : i32
    %c0_i32_1 = arith.constant 0 : i32
    return %c0_i32, %c0_i32_0 : i32, i32
  }
  func.func @transform_3(%arg0: i32) -> (i32, i32, i32) {
    %c0_i32 = arith.constant 0 : i32
    %c0_i32_0 = arith.constant 0 : i32
    %c0_i32_1 = arith.constant 0 : i32
    %c0_i32_2 = arith.constant 0 : i32
    return %c0_i32, %c0_i32_0, %c0_i32_1 : i32, i32, i32
  }
  func.func @transform_4(%arg0: i32) -> (i32, i32, i32) {
    %c0_i32 = arith.constant 0 : i32
    %c0_i32_0 = arith.constant 0 : i32
    %c0_i32_1 = arith.constant 0 : i32
    %c0_i32_2 = arith.constant 0 : i32
    return %c0_i32, %c0_i32_0, %c0_i32_1 : i32, i32, i32
  }
  func.func @transform_5(%arg0: i32) -> (i32, i32, i32) {
    %c0_i32 = arith.constant 0 : i32
    %c0_i32_0 = arith.constant 0 : i32
    %c0_i32_1 = arith.constant 0 : i32
    %c0_i32_2 = arith.constant 0 : i32
    return %c0_i32, %c0_i32_0, %c0_i32_1 : i32, i32, i32
  }
  func.func @transform_6(%arg0: i32) -> (i32, i32) {
    %c0_i32 = arith.constant 0 : i32
    %c0_i32_0 = arith.constant 0 : i32
    %c0_i32_1 = arith.constant 0 : i32
    return %c0_i32, %c0_i32_0 : i32, i32
  }
  func.func @transform_7(%arg0: i32) -> (i32, i32) {
    %c0_i32 = arith.constant 0 : i32
    %c0_i32_0 = arith.constant 0 : i32
    %c0_i32_1 = arith.constant 0 : i32
    return %c0_i32, %c0_i32_0 : i32, i32
  }
  func.func @transform_8(%arg0: i32) -> (i32, i32) {
    %c0_i32 = arith.constant 0 : i32
    %c0_i32_0 = arith.constant 0 : i32
    %c0_i32_1 = arith.constant 0 : i32
    return %c0_i32, %c0_i32_0 : i32, i32
  }
  func.func @transform_9(%arg0: i32) -> (i32, i32) {
    %c0_i32 = arith.constant 0 : i32
    %c0_i32_0 = arith.constant 0 : i32
    %c0_i32_1 = arith.constant 0 : i32
    return %c0_i32, %c0_i32_0 : i32, i32
  }
  func.func @transform_10(%arg0: i32) -> (i32, i32) {
    %c0_i32 = arith.constant 0 : i32
    %c0_i32_0 = arith.constant 0 : i32
    %c0_i32_1 = arith.constant 0 : i32
    return %c0_i32, %c0_i32_0 : i32, i32
  }
  func.func @transform_11(%arg0: i32) -> (i32, i32) {
    %c0_i32 = arith.constant 0 : i32
    %c0_i32_0 = arith.constant 0 : i32
    %c0_i32_1 = arith.constant 0 : i32
    return %c0_i32, %c0_i32_0 : i32, i32
  }
  func.func @transform_12(%arg0: i32) -> (i32, i32) {
    %c0_i32 = arith.constant 0 : i32
    %c0_i32_0 = arith.constant 0 : i32
    %c0_i32_1 = arith.constant 0 : i32
    return %c0_i32, %c0_i32_0 : i32, i32
  }
  func.func @transform_13(%arg0: i32) -> (i32, i32, i32) {
    %c0_i32 = arith.constant 0 : i32
    %c0_i32_0 = arith.constant 0 : i32
    %c0_i32_1 = arith.constant 0 : i32
    return %arg0, %c0_i32, %c0_i32_0 : i32, i32, i32
  }
}

</mosaic_0001>

<bundles_post_ra>
// kernel: tpu_custom_call.1
= control target key start
LH: loop header
LB: loop body
LE: loop exit
PB: predicated region body
PF: predicated region fallthrough
CT: control target
= control target key end

     0   :  { %s8390_s0 = inlined_call_operand.vmem [shape: f32[2,8,128], index: 0, kind: input, shape index: {}]   ;;  %s8391_s1 = inlined_call_operand.vmem [shape: f32[1,128], index: 1, kind: input, shape index: {}]   ;;  %s8392_s2 = inlined_call_operand.vmem [shape: f32[1,128], index: 2, kind: input, shape index: {}]   ;;  %s8393_s3 = inlined_call_operand.vmem [shape: bf16[24,128,16], index: 3, kind: input, shape index: {}]   ;;  %s8394_s4 = inlined_call_operand.vmem [shape: f32[24,1,16], index: 4, kind: input, shape index: {}]   ;;  %s8395_s5 = inlined_call_operand.vmem [shape: bf16[8,16,128], index: 5, kind: input, shape index: {}]   ;;  %s8396_s6 = inlined_call_operand.vmem [shape: f32[1,128], index: 6, kind: input, shape index: {}]   ;;  %s8397_s7 = inlined_call_operand.vmem [shape: f32[1,128], index: 7, kind: input, shape index: {}]   ;;  %s8398_s8 = inlined_call_operand.vmem [shape: f32[1,128], index: 8, kind: input, shape index: {}]   ;;  %s8399_s9 = inlined_call_operand.vmem [shape: bf16[128,512], index: 9, kind: input, shape index: {}]   ;;  %s8400_s10 = inlined_call_operand.vmem [shape: f32[1,512], index: 10, kind: input, shape index: {}]   ;;  %s8401_s11 = inlined_call_operand.vmem [shape: bf16[512,128], index: 11, kind: input, shape index: {}]   ;;  %s8402_s12 = inlined_call_operand.vmem [shape: f32[1,128], index: 12, kind: input, shape index: {}]   ;;  %s8403_s13 = inlined_call_operand.hbm [shape: f32[2,8,128], index: 13, kind: output, shape index: {}]  }
   0x1   :  { %8404 = sst [smem:[#allocation6_spill]] %s8390_s0 }
   0x2   :  { %8405 = sst [smem:[#allocation7_spill]] %s8391_s1 }
   0x3   :  { %18 = vsyncpa [#allocation3], 0 }
   0x4   :  { %20 = vsyncpa [#allocation3 + $0x1], 0  ;;  %s6936_s25 = smov 0   ;;  %s6938_s26 = smov 0  }
   0x5   :  { %s6940_s27 = smov 0   ;;  %s6942_s28 = smov 0  }
   0x6 LB: > { %s6957_s29 = sadd.s32 4294967295, %s6860_s28   ;;  %s5179_s30 = sadd.s32 4294967294, %s6860_s28   ;;  %s6860_s28 = sphi %s6942_s28, %s8415_s28   ;;  %s6856_s27 = sphi %s6940_s27, %s8414_s27   ;;  %s6852_s26 = sphi %s6938_s26, %s8413_s26   ;;  %s6848_s25 = sphi %s6936_s25, %s8412_s25  }
   0x7   : > { %s6961_s14 = sadd.s32 1, %s6860_s28   ;;  %s311_s15 = sadd.s32 1, %s6856_s27 }
   0x8   : > { %s308_s16 = ssub.s32 %s6860_s28, %s6961_s14  ;;  %p321_p0 = scmp.ne.s32.totalorder %s6856_s27, %s6852_s26 }
   0x9   : > { %p309_p1 = scmp.eq.s32.totalorder %s308_s16, 0  ;;  %p322_p2 = scmp.eq.s32.totalorder %s6957_s29, 1 }
   0xa   : > { %p327_p3 = scmp.ne.s32.totalorder %s6852_s26, %s6848_s25  ;;  %p328_p4 = scmp.eq.s32.totalorder %s5179_s30, 1 }
   0xb   : > { %s6972_s17 = scalar_select %p309_p1, %s6856_s27, %s311_s15  }
   0xc   : > { %p6974_p5 = por %p322_p2, %p321_p0  ;;  %p6978_p6 = por %p328_p4, %p327_p3 }
   0xd   : > { %8406 = sst [smem:[#allocation5_spill]] %s6972_s17  ;;  %p5182_p7 = scmp.ge.s32.totalorder %s6860_s28, 1 }
   0xe   : > { %p389_p8 = scmp.lt.s32.totalorder %s6860_s28, 3 }
  0x10   : > { %p390_p9 = pnand %p5182_p7, %p389_p8 }
  0x11   : > { %p432_p10 = scmp.lt.s32.totalorder (!%p390_p9), %s6957_s29, 1  ;;  %s8409_s0 = sld [smem:[#allocation6_spill]] (!%p390_p9)  ;;  %v6481_v1 = vld [vmem:[%s8393_s3] sm:$0xff] (!%p390_p9)   ;;  %v6862_v3 = vmov (!%p390_p9), 0.0   ;;  %v6483_v4 = vld [vmem:[%s8393_s3 + $0x8] sm:$0xff] (!%p390_p9)   ;;  %v6485_v6 = vld [vmem:[%s8393_s3 + $0x10] sm:$0xff] (!%p390_p9)  }
  0x12   : > { %393 = sbr.rel (%p390_p9) target bundleno = 2524 (0x9dc), region = 72  ;;  %v6482_v2 = vld [vmem:[%s8393_s3 + $0x40] sm:$0xff] (!%p390_p9)   ;;  %5815 = vmatprep.subr.bf16.mxu0 (!%p390_p9), %v6862_v3  ;;  %5835 = vmatprep.subr.bf16.mxu1 (!%p390_p9), %v6862_v3  ;;  %v6484_v5 = vld [vmem:[%s8393_s3 + $0x48] sm:$0xff] (!%p390_p9)   ;;  %v6486_v7 = vld [vmem:[%s8393_s3 + $0x50] sm:$0xff] (!%p390_p9)   ;;  %vm6863_vm0 = vmmov (!%p390_p9), 0   ;;  %s8410_s1 = sld [smem:[#allocation7_spill]] (!%p390_p9) }
  0x13   : > { %5816 = vmatpush3.bf16.msra.mxu0 (!%p390_p9), %v6481_v1  ;;  %5836 = vmatpush3.bf16.msra.mxu1 (!%p390_p9), %v6482_v2  ;;  %v6487_v12 = vld [vmem:[%s8393_s3 + $0x18] sm:$0xff] (!%p390_p9)   ;;  %v6489_v14 = vld [vmem:[%s8393_s3 + $0x20] sm:$0xff] (!%p390_p9)   ;;  %v6491_v16 = vld [vmem:[%s8393_s3 + $0x28] sm:$0xff] (!%p390_p9)   ;;  %vm3155_vm1 = vcmask (!%p390_p9), 130048   ;;  %vm3632_vm2 = vcmask (!%p390_p9), 1043456   ;;  %vm3532_vm3 = vcmask (!%p390_p9), 64512  }
  0x14   : > { %5817 = vmatprep.subr.bf16.mxu0 (!%p390_p9), %v6862_v3  ;;  %5837 = vmatprep.subr.bf16.mxu1 (!%p390_p9), %v6862_v3  ;;  %v6488_v13 = vld [vmem:[%s8393_s3 + $0x58] sm:$0xff] (!%p390_p9)   ;;  %v6490_v15 = vld [vmem:[%s8393_s3 + $0x60] sm:$0xff] (!%p390_p9)   ;;  %v6492_v17 = vld [vmem:[%s8393_s3 + $0x68] sm:$0xff] (!%p390_p9)   ;;  %s429_s17 = sand.u32 (!%p390_p9), 1, %s6852_s26  }
  0x15   : > { %v6493_v18 = vld [vmem:[%s8393_s3 + $0x30] sm:$0xff] (!%p390_p9)   ;;  %v6495_v20 = vld [vmem:[%s8393_s3 + $0x38] sm:$0xff] (!%p390_p9)   ;;  %5831 = vmatprep.mubr.msk.bf16.mxu0 (!%p390_p9), %vm6863_vm0, %v6862_v3  ;;  %5851 = vmatprep.mubr.msk.bf16.mxu1 (!%p390_p9), %vm6863_vm0, %v6862_v3  ;;  %v5186_v28 = vld [vmem:[%s8392_s2] ss:$0 sm:$0xff] (!%p390_p9)  ;;  %s5183_s30 = sshll.u32 (!%p390_p9), %s429_s17, 3  ;;  %s5107_s23 = scalar_lea.sflag (!%p390_p9), [#allocation3], %s429_s17 }
  0x16   : > { %v6494_v19 = vld [vmem:[%s8393_s3 + $0x70] sm:$0xff] (!%p390_p9)   ;;  %v6496_v21 = vld [vmem:[%s8393_s3 + $0x78] sm:$0xff] (!%p390_p9)   ;;  %v6497_v31 = vld [vmem:[%s8393_s3 + $0x80] sm:$0xff] (!%p390_p9)  }
  0x17   : > { %5818 = vmatpush3.bf16.msra.mxu0 (!%p390_p9), %v6483_v4  ;;  %5838 = vmatpush3.bf16.msra.mxu1 (!%p390_p9), %v6484_v5  ;;  %v6498_v32 = vld [vmem:[%s8393_s3 + $0xc0] sm:$0xff] (!%p390_p9)   ;;  %v6499_v34 = vld [vmem:[%s8393_s3 + $0x88] sm:$0xff] (!%p390_p9)   ;;  %v6501_v36 = vld [vmem:[%s8393_s3 + $0x90] sm:$0xff] (!%p390_p9)  }
  0x18   : > { %5819 = vmatprep.subr.bf16.mxu0 (!%p390_p9), %v6862_v3  ;;  %5839 = vmatprep.subr.bf16.mxu1 (!%p390_p9), %v6862_v3  ;;  %v5185_v26 = vld [vmem:[%s8410_s1] ss:$0 sm:$0xff] (!%p390_p9)  ;;  %v6500_v35 = vld [vmem:[%s8393_s3 + $0xc8] sm:$0xff] (!%p390_p9)   ;;  %v6502_v37 = vld [vmem:[%s8393_s3 + $0xd0] sm:$0xff] (!%p390_p9)  }
  0x19   : > { %s433_s20 = scalar_select %p432_p10, %s6957_s29, 1  ;;  %v6503_v38 = vld [vmem:[%s8393_s3 + $0x98] sm:$0xff]   ;;  %v6505_v40 = vld [vmem:[%s8393_s3 + $0xa0] sm:$0xff]   ;;  %v6507_v42 = vld [vmem:[%s8393_s3 + $0xa8] sm:$0xff]  }
  0x1a   : > { %v6504_v39 = vld [vmem:[%s8393_s3 + $0xd8] sm:$0xff]   ;;  %v6506_v41 = vld [vmem:[%s8393_s3 + $0xe0] sm:$0xff]   ;;  %v6508_v43 = vld [vmem:[%s8393_s3 + $0xe8] sm:$0xff]  }
  0x1b   : > { %s5184_s21 = sshll.u32 %s433_s20, 3  ;;  %5820 = vmatpush3.bf16.msra.mxu0 %v6485_v6  ;;  %5840 = vmatpush3.bf16.msra.mxu1 %v6486_v7  ;;  %v6509_v44 = vld [vmem:[%s8393_s3 + $0xb0] sm:$0xff]   ;;  %v6511_v46 = vld [vmem:[%s8393_s3 + $0xb8] sm:$0xff]   ;;  %v6513_v48 = vld [vmem:[%s8393_s3 + $0x100] sm:$0xff]   ;;  %s431_s20 = scalar_lea.vmem [#allocation2], %s5183_s30 }
  0x1c   : > { %s6989_s24 = scalar_lea.vmem %s8409_s0, %s5184_s21  ;;  %5821 = vmatprep.subr.bf16.mxu0 %v6862_v3  ;;  %5841 = vmatprep.subr.bf16.mxu1 %v6862_v3  ;;  %v6510_v45 = vld [vmem:[%s8393_s3 + $0xf0] sm:$0xff]   ;;  %v6512_v47 = vld [vmem:[%s8393_s3 + $0xf8] sm:$0xff]   ;;  %v6514_v49 = vld [vmem:[%s8393_s3 + $0x140] sm:$0xff]   ;;  %s5504_s0 = sshll.u32 %s6957_s29, 7 }
  0x1d   : > { %v437_v0 = vld [vmem:[%s6989_s24] sm:$0xff]  ;;  %v6515_v50 = vld [vmem:[%s8393_s3 + $0x108] sm:$0xff]   ;;  %v6517_v52 = vld [vmem:[%s8393_s3 + $0x110] sm:$0xff]   ;;  %s5120_s1 = sshll.u32 %s431_s20, 4  ;;  %s8348_s22 = scalar_lea.hbm %s8403_s13, %s5504_s0  ;;  %s8350_s1 = int_to_ptr.vmem [resolvable:$true] %s5120_s1 }
  0x1e   : > { %440 = vadd.xlane.f32.xlu0 %v437_v0  ;;  %v6516_v51 = vld [vmem:[%s8393_s3 + $0x148] sm:$0xff]   ;;  %v6518_v53 = vld [vmem:[%s8393_s3 + $0x150] sm:$0xff]   ;;  %v6519_v54 = vld [vmem:[%s8393_s3 + $0x118] sm:$0xff]   ;;  %s6798_s15 = scalar_lea.vmem %s8350_s1, 128  ;;  %s6865_s29 = smov [#allocation2]  }
  0x1f   : > { %5822 = vmatpush3.bf16.msra.mxu0 %v6487_v12  ;;  %5842 = vmatpush3.bf16.msra.mxu1 %v6488_v13  ;;  %v6520_v55 = vld [vmem:[%s8393_s3 + $0x158] sm:$0xff]   ;;  %v6521_v56 = vld [vmem:[%s8393_s3 + $0x120] sm:$0xff]   ;;  %v6523_v58 = vld [vmem:[%s8393_s3 + $0x128] sm:$0xff]   ;;  %p6799_p11 = scmp.ne.s32.totalorder %s8350_s1, %s6798_s15  ;;  %s6802_s30 = sshll.u32 %s6865_s29, 4  ;;  %s6803_s30 = int_to_ptr.vmem [resolvable:$false] %s6802_s30 }
  0x20   : > { %5823 = vmatprep.subr.bf16.mxu0 %v6862_v3  ;;  %5843 = vmatprep.subr.bf16.mxu1 %v6862_v3  ;;  %v6522_v57 = vld [vmem:[%s8393_s3 + $0x160] sm:$0xff]   ;;  %v6524_v59 = vld [vmem:[%s8393_s3 + $0x168] sm:$0xff]   ;;  %v6525_v60 = vld [vmem:[%s8393_s3 + $0x130] sm:$0xff]   ;;  %s6804_s16 = scalar_lea.vmem %s6803_s30, 256  ;;  %p6805_p0 = scmp.lt.s32.totalorder %s8350_s1, %s6803_s30 }
  0x21   : > { %v6526_v61 = vld [vmem:[%s8393_s3 + $0x170] sm:$0xff]   ;;  %v6527_v62 = vld [vmem:[%s8393_s3 + $0x138] sm:$0xff]   ;;  %v6530_v1 = vld [vmem:[%s8393_s3 + $0x1c0] sm:$0xff]   ;;  %p6800_p12 = pnand %p6799_p11, %p6974_p5  ;;  %p6806_p1 = scmp.lt.s32.totalorder %s6804_s16, %s6798_s15 }
  0x22   : > { %v6528_v63 = vld [vmem:[%s8393_s3 + $0x178] sm:$0xff]   ;;  %v6531_v2 = vld [vmem:[%s8393_s3 + $0x188] sm:$0xff]   ;;  %v6533_v5 = vld [vmem:[%s8393_s3 + $0x190] sm:$0xff]  }
  0x23   : > { %5824 = vmatpush3.bf16.msra.mxu0 %v6489_v14  ;;  %5844 = vmatpush3.bf16.msra.mxu1 %v6490_v15  ;;  %v6532_v4 = vld [vmem:[%s8393_s3 + $0x1c8] sm:$0xff]   ;;  %v6534_v6 = vld [vmem:[%s8393_s3 + $0x1d0] sm:$0xff]   ;;  %v6535_v7 = vld [vmem:[%s8393_s3 + $0x198] sm:$0xff]   ;;  %p6801_p13 = pneg %p6800_p12  ;;  %p6807_p2 = por %p6806_p1, %p6805_p0 }
  0x24   : > { %5825 = vmatprep.subr.bf16.mxu0 %v6862_v3  ;;  %5845 = vmatprep.subr.bf16.mxu1 %v6862_v3  ;;  %v6540_v12 = vld [vmem:[%s8393_s3 + $0x1e8] sm:$0xff]   ;;  %v6541_v13 = vld [vmem:[%s8393_s3 + $0x1b0] sm:$0xff]   ;;  %v6543_v15 = vld [vmem:[%s8393_s3 + $0x1b8] sm:$0xff]  }
  0x25   : > { %v6542_v14 = vld [vmem:[%s8393_s3 + $0x1f0] sm:$0xff]   ;;  %p6808_p3 = pnand %p6807_p2, %p6801_p13 }
  0x27   : > { %5826 = vmatpush3.bf16.msra.mxu0 %v6491_v16  ;;  %5846 = vmatpush3.bf16.msra.mxu1 %v6492_v17  ;;  %v6544_v16 = vld [vmem:[%s8393_s3 + $0x1f8] sm:$0xff]   ;;  %v6545_v17 = vld [vmem:[%s8393_s3 + $0x200] sm:$0xff]  }
  0x28   : > { %5827 = vmatprep.subr.bf16.mxu0 %v6862_v3  ;;  %5847 = vmatprep.subr.bf16.mxu1 %v6862_v3 }
  0x2b   : > { %5828 = vmatpush3.bf16.msra.mxu0 %v6493_v18  ;;  %5848 = vmatpush3.bf16.msra.mxu1 %v6494_v19  ;;  %v6546_v18 = vld [vmem:[%s8393_s3 + $0x240] sm:$0xff]   ;;  %v6547_v19 = vld [vmem:[%s8393_s3 + $0x208] sm:$0xff]  }
  0x2c   : > { %5829 = vmatprep.subr.bf16.mxu0 %v6862_v3  ;;  %5849 = vmatprep.subr.bf16.mxu1 %v6862_v3 }
  0x2f   : > { %5830 = vmatpush3.bf16.msra.mxu0 %v6495_v20  ;;  %5850 = vmatpush3.bf16.msra.mxu1 %v6496_v21  ;;  %v6548_v20 = vld [vmem:[%s8393_s3 + $0x248] sm:$0xff]   ;;  %v6549_v21 = vld [vmem:[%s8393_s3 + $0x210] sm:$0xff]  }
  0x30   : > { %5855 = vmatprep.subr.bf16.mxu0 %v6862_v3  ;;  %5875 = vmatprep.subr.bf16.mxu1 %v6862_v3 }
  0xab   : > { %v441_v8 = vpop.xlane.xlu0 %440 }
  0xac   : > { %v443_v9 = vmul.f32 0.0078125, %v441_v8  ;;  %v6536_v8 = vld [vmem:[%s8393_s3 + $0x1d8] sm:$0xff]  }
  0xae   : > { %v444_v10 = vsub.f32 %v437_v0, %v443_v9  ;;  %v6529_v0 = vld [vmem:[%s8393_s3 + $0x180] sm:$0xff]  }
  0xaf   : > { %v6537_v9 = vld [vmem:[%s8393_s3 + $0x1a0] sm:$0xff]  }
  0xb0   : > { %v445_v11 = vmul.f32 %v444_v10, %v444_v10 }
  0xb2   : > { %446 = vadd.xlane.f32.xlu0 %v445_v11  ;;  %v6539_v11 = vld [vmem:[%s8393_s3 + $0x1a8] sm:$0xff]  }
 0x13f   : > { %v447_v22 = vpop.xlane.xlu0 %446 }
 0x140   : > { %v448_v23 = vmul.f32 0.0078125, %v447_v22  ;;  %v6550_v22 = vld [vmem:[%s8393_s3 + $0x250] sm:$0xff]  }
 0x142   : > { %v449_v24 = vadd.f32 1e-05, %v448_v23  ;;  %v6551_v23 = vld [vmem:[%s8393_s3 + $0x218] sm:$0xff]  }
 0x144   : > { %6761 = vrsqrt.f32 %v449_v24  ;;  %v6552_v24 = vld [vmem:[%s8393_s3 + $0x258] sm:$0xff]  }
 0x14e   : > { %v6762_v25 = vpop.eup %6761 }
 0x14f   : > { %v451_v27 = vmul.f32 %v6762_v25, %v444_v10  ;;  %v6538_v10 = vld [vmem:[%s8393_s3 + $0x1e0] sm:$0xff]  }
 0x150   : > { %v6553_v25 = vld [vmem:[%s8393_s3 + $0x220] sm:$0xff]  }
 0x151   : > { %v458_v29 = vmul.f32 %v5185_v26, %v451_v27  ;;  %v6554_v26 = vld [vmem:[%s8393_s3 + $0x260] sm:$0xff]   ;;  %v6555_v27 = vld [vmem:[%s8393_s3 + $0x228] sm:$0xff]  }
 0x153   : > { %v465_v30 = vadd.f32 %v5186_v28, %v458_v29  ;;  %v6556_v28 = vld [vmem:[%s8393_s3 + $0x268] sm:$0xff]   ;;  %v6557_v29 = vld [vmem:[%s8393_s3 + $0x230] sm:$0xff]  }
 0x155   : > { %v7074_v33 = vpack.c.bf16 %v465_v30, %v465_v30  ;;  %v6558_v30 = vld [vmem:[%s8393_s3 + $0x270] sm:$0xff]  }
 0x157   : > { %5832 = vmatmul.mubr.bf16.vlgmr.msra.gmra.mrb[0].mxu0 %v7074_v33  ;;  %5852 = vmatmul.mubr.bf16.vlgmr.msra.gmra.mrb[0].mxu1 %v7074_v33 }
 0x158   : > { %5856 = vmatpush3.bf16.msra.mxu0 %v6497_v31  ;;  %5876 = vmatpush3.bf16.msra.mxu1 %v6498_v32  ;;  %v6559_v31 = vld [vmem:[%s8393_s3 + $0x238] sm:$0xff]  }
 0x159   : > { %5857 = vmatprep.subr.bf16.mxu0 %v6862_v3  ;;  %5877 = vmatprep.subr.bf16.mxu1 %v6862_v3  ;;  %v6560_v32 = vld [vmem:[%s8393_s3 + $0x278] sm:$0xff]  }
 0x15a   : > { %5871 = vmatprep.mubr.msk.bf16.mxu0 %vm6863_vm0, %v6862_v3  ;;  %5891 = vmatprep.mubr.msk.bf16.mxu1 %vm6863_vm0, %v6862_v3 }
 0x15c   : > { %5858 = vmatpush3.bf16.msra.mxu0 %v6499_v34  ;;  %5878 = vmatpush3.bf16.msra.mxu1 %v6500_v35  ;;  %v6561_v34 = vld [vmem:[%s8393_s3 + $0x280] sm:$0xff]  }
 0x15d   : > { %5859 = vmatprep.subr.bf16.mxu0 %v6862_v3  ;;  %5879 = vmatprep.subr.bf16.mxu1 %v6862_v3  ;;  %v6562_v35 = vld [vmem:[%s8393_s3 + $0x2c0] sm:$0xff]  }
 0x160   : > { %5860 = vmatpush3.bf16.msra.mxu0 %v6501_v36  ;;  %5880 = vmatpush3.bf16.msra.mxu1 %v6502_v37  ;;  %v6563_v36 = vld [vmem:[%s8393_s3 + $0x288] sm:$0xff]  }
 0x161   : > { %5861 = vmatprep.subr.bf16.mxu0 %v6862_v3  ;;  %5881 = vmatprep.subr.bf16.mxu1 %v6862_v3  ;;  %v6564_v37 = vld [vmem:[%s8393_s3 + $0x2c8] sm:$0xff]  }
 0x164   : > { %5862 = vmatpush3.bf16.msra.mxu0 %v6503_v38  ;;  %5882 = vmatpush3.bf16.msra.mxu1 %v6504_v39  ;;  %v6565_v38 = vld [vmem:[%s8393_s3 + $0x290] sm:$0xff]  }
 0x165   : > { %5863 = vmatprep.subr.bf16.mxu0 %v6862_v3  ;;  %5883 = vmatprep.subr.bf16.mxu1 %v6862_v3  ;;  %v6566_v39 = vld [vmem:[%s8393_s3 + $0x2d0] sm:$0xff]  }
 0x168   : > { %5864 = vmatpush3.bf16.msra.mxu0 %v6505_v40  ;;  %5884 = vmatpush3.bf16.msra.mxu1 %v6506_v41  ;;  %v6567_v40 = vld [vmem:[%s8393_s3 + $0x298] sm:$0xff]  }
 0x169   : > { %5865 = vmatprep.subr.bf16.mxu0 %v6862_v3  ;;  %5885 = vmatprep.subr.bf16.mxu1 %v6862_v3  ;;  %v6568_v41 = vld [vmem:[%s8393_s3 + $0x2d8] sm:$0xff]  }
 0x16c   : > { %5866 = vmatpush3.bf16.msra.mxu0 %v6507_v42  ;;  %5886 = vmatpush3.bf16.msra.mxu1 %v6508_v43  ;;  %v6569_v42 = vld [vmem:[%s8393_s3 + $0x2a0] sm:$0xff]  }
 0x16d   : > { %5867 = vmatprep.subr.bf16.mxu0 %v6862_v3  ;;  %5887 = vmatprep.subr.bf16.mxu1 %v6862_v3  ;;  %v6570_v43 = vld [vmem:[%s8393_s3 + $0x2e0] sm:$0xff]  }
 0x170   : > { %5868 = vmatpush3.bf16.msra.mxu0 %v6509_v44  ;;  %5888 = vmatpush3.bf16.msra.mxu1 %v6510_v45  ;;  %v6571_v44 = vld [vmem:[%s8393_s3 + $0x2a8] sm:$0xff]  }
 0x171   : > { %5869 = vmatprep.subr.bf16.mxu0 %v6862_v3  ;;  %5889 = vmatprep.subr.bf16.mxu1 %v6862_v3  ;;  %v6572_v45 = vld [vmem:[%s8393_s3 + $0x2e8] sm:$0xff]  }
 0x174   : > { %5870 = vmatpush3.bf16.msra.mxu0 %v6511_v46  ;;  %5890 = vmatpush3.bf16.msra.mxu1 %v6512_v47  ;;  %v6573_v46 = vld [vmem:[%s8393_s3 + $0x2b0] sm:$0xff]  }
 0x175   : > { %5895 = vmatprep.subr.bf16.mxu0 %v6862_v3  ;;  %5915 = vmatprep.subr.bf16.mxu1 %v6862_v3  ;;  %v6574_v47 = vld [vmem:[%s8393_s3 + $0x2f0] sm:$0xff]  }
 0x177   : > { %5872 = vmatmul.mubr.bf16.vlgmr.msra.gmra.mrb[4].mxu0 %v7074_v33  ;;  %5892 = vmatmul.mubr.bf16.vlgmr.msra.gmra.mrb[4].mxu1 %v7074_v33 }
 0x178   : > { %5896 = vmatpush3.bf16.msra.mxu0 %v6513_v48  ;;  %5916 = vmatpush3.bf16.msra.mxu1 %v6514_v49  ;;  %v6575_v48 = vld [vmem:[%s8393_s3 + $0x2b8] sm:$0xff]  }
 0x179   : > { %5897 = vmatprep.subr.bf16.mxu0 %v6862_v3  ;;  %5917 = vmatprep.subr.bf16.mxu1 %v6862_v3  ;;  %v6576_v49 = vld [vmem:[%s8393_s3 + $0x2f8] sm:$0xff]  }
 0x17a   : > { %5911 = vmatprep.mubr.msk.bf16.mxu0 %vm6863_vm0, %v6862_v3  ;;  %5931 = vmatprep.mubr.msk.bf16.mxu1 %vm6863_vm0, %v6862_v3 }
 0x17c   : > { %5898 = vmatpush3.bf16.msra.mxu0 %v6515_v50  ;;  %5918 = vmatpush3.bf16.msra.mxu1 %v6516_v51  ;;  %v6577_v50 = vld [vmem:[%s8393_s3 + $0x300] sm:$0xff]  }
 0x17d   : > { %5899 = vmatprep.subr.bf16.mxu0 %v6862_v3  ;;  %5919 = vmatprep.subr.bf16.mxu1 %v6862_v3  ;;  %v6578_v51 = vld [vmem:[%s8393_s3 + $0x340] sm:$0xff]  }
 0x180   : > { %5900 = vmatpush3.bf16.msra.mxu0 %v6517_v52  ;;  %5920 = vmatpush3.bf16.msra.mxu1 %v6518_v53  ;;  %v6579_v52 = vld [vmem:[%s8393_s3 + $0x308] sm:$0xff]  }
 0x181   : > { %5901 = vmatprep.subr.bf16.mxu0 %v6862_v3  ;;  %5921 = vmatprep.subr.bf16.mxu1 %v6862_v3  ;;  %v6580_v53 = vld [vmem:[%s8393_s3 + $0x348] sm:$0xff]  }
 0x184   : > { %5902 = vmatpush3.bf16.msra.mxu0 %v6519_v54  ;;  %5922 = vmatpush3.bf16.msra.mxu1 %v6520_v55  ;;  %v6581_v54 = vld [vmem:[%s8393_s3 + $0x310] sm:$0xff]  }
 0x185   : > { %5903 = vmatprep.subr.bf16.mxu0 %v6862_v3  ;;  %5923 = vmatprep.subr.bf16.mxu1 %v6862_v3  ;;  %v6582_v55 = vld [vmem:[%s8393_s3 + $0x350] sm:$0xff]  }
 0x188   : > { %5904 = vmatpush3.bf16.msra.mxu0 %v6521_v56  ;;  %5924 = vmatpush3.bf16.msra.mxu1 %v6522_v57  ;;  %v6583_v56 = vld [vmem:[%s8393_s3 + $0x318] sm:$0xff]  }
 0x189   : > { %5905 = vmatprep.subr.bf16.mxu0 %v6862_v3  ;;  %5925 = vmatprep.subr.bf16.mxu1 %v6862_v3  ;;  %v6584_v57 = vld [vmem:[%s8393_s3 + $0x358] sm:$0xff]  }
 0x18c   : > { %5906 = vmatpush3.bf16.msra.mxu0 %v6523_v58  ;;  %5926 = vmatpush3.bf16.msra.mxu1 %v6524_v59  ;;  %v6585_v58 = vld [vmem:[%s8393_s3 + $0x320] sm:$0xff]  }
 0x18d   : > { %5907 = vmatprep.subr.bf16.mxu0 %v6862_v3  ;;  %5927 = vmatprep.subr.bf16.mxu1 %v6862_v3  ;;  %v6586_v59 = vld [vmem:[%s8393_s3 + $0x360] sm:$0xff]  }
 0x190   : > { %5908 = vmatpush3.bf16.msra.mxu0 %v6525_v60  ;;  %5928 = vmatpush3.bf16.msra.mxu1 %v6526_v61  ;;  %v6587_v60 = vld [vmem:[%s8393_s3 + $0x328] sm:$0xff]  }
 0x191   : > { %5909 = vmatprep.subr.bf16.mxu0 %v6862_v3  ;;  %5929 = vmatprep.subr.bf16.mxu1 %v6862_v3  ;;  %v6588_v61 = vld [vmem:[%s8393_s3 + $0x368] sm:$0xff]  }
 0x194   : > { %5910 = vmatpush3.bf16.msra.mxu0 %v6527_v62  ;;  %5930 = vmatpush3.bf16.msra.mxu1 %v6528_v63  ;;  %v6589_v62 = vld [vmem:[%s8393_s3 + $0x330] sm:$0xff]  }
 0x195   : > { %5935 = vmatprep.subr.bf16.mxu0 %v6862_v3  ;;  %5955 = vmatprep.subr.bf16.mxu1 %v6862_v3  ;;  %v6590_v63 = vld [vmem:[%s8393_s3 + $0x370] sm:$0xff]  }
 0x197   : > { %5912 = vmatmul.mubr.bf16.vlgmr.msra.gmra.mrb[8].mxu0 %v7074_v33  ;;  %5932 = vmatmul.mubr.bf16.vlgmr.msra.gmra.mrb[8].mxu1 %v7074_v33 }
 0x198   : > { %5936 = vmatpush3.bf16.msra.mxu0 %v6529_v0  ;;  %5956 = vmatpush3.bf16.msra.mxu1 %v6530_v1  ;;  %v6591_v0 = vld [vmem:[%s8393_s3 + $0x338] sm:$0xff]  }
 0x199   : > { %5937 = vmatprep.subr.bf16.mxu0 %v6862_v3  ;;  %5957 = vmatprep.subr.bf16.mxu1 %v6862_v3  ;;  %v6592_v1 = vld [vmem:[%s8393_s3 + $0x378] sm:$0xff]  }
 0x19a   : > { %5951 = vmatprep.mubr.msk.bf16.mxu0 %vm6863_vm0, %v6862_v3  ;;  %5971 = vmatprep.mubr.msk.bf16.mxu1 %vm6863_vm0, %v6862_v3 }
 0x19c   : > { %5938 = vmatpush3.bf16.msra.mxu0 %v6531_v2  ;;  %5958 = vmatpush3.bf16.msra.mxu1 %v6532_v4  ;;  %v6593_v2 = vld [vmem:[%s8393_s3 + $0x380] sm:$0xff]  }
 0x19d   : > { %5939 = vmatprep.subr.bf16.mxu0 %v6862_v3  ;;  %5959 = vmatprep.subr.bf16.mxu1 %v6862_v3  ;;  %v6594_v4 = vld [vmem:[%s8393_s3 + $0x3c0] sm:$0xff]  }
 0x1a0   : > { %5940 = vmatpush3.bf16.msra.mxu0 %v6533_v5  ;;  %5960 = vmatpush3.bf16.msra.mxu1 %v6534_v6  ;;  %v6595_v5 = vld [vmem:[%s8393_s3 + $0x388] sm:$0xff]  }
 0x1a1   : > { %5941 = vmatprep.subr.bf16.mxu0 %v6862_v3  ;;  %5961 = vmatprep.subr.bf16.mxu1 %v6862_v3  ;;  %v6596_v6 = vld [vmem:[%s8393_s3 + $0x3c8] sm:$0xff]  }
 0x1a4   : > { %5942 = vmatpush3.bf16.msra.mxu0 %v6535_v7  ;;  %5962 = vmatpush3.bf16.msra.mxu1 %v6536_v8  ;;  %v6597_v7 = vld [vmem:[%s8393_s3 + $0x390] sm:$0xff]  }
 0x1a5   : > { %5943 = vmatprep.subr.bf16.mxu0 %v6862_v3  ;;  %5963 = vmatprep.subr.bf16.mxu1 %v6862_v3  ;;  %v6598_v8 = vld [vmem:[%s8393_s3 + $0x3d0] sm:$0xff]  }
 0x1a8   : > { %5944 = vmatpush3.bf16.msra.mxu0 %v6537_v9  ;;  %5964 = vmatpush3.bf16.msra.mxu1 %v6538_v10  ;;  %v6599_v9 = vld [vmem:[%s8393_s3 + $0x398] sm:$0xff]  }
 0x1a9   : > { %5945 = vmatprep.subr.bf16.mxu0 %v6862_v3  ;;  %5965 = vmatprep.subr.bf16.mxu1 %v6862_v3  ;;  %v6600_v10 = vld [vmem:[%s8393_s3 + $0x3d8] sm:$0xff]  }
 0x1ac   : > { %5946 = vmatpush3.bf16.msra.mxu0 %v6539_v11  ;;  %5966 = vmatpush3.bf16.msra.mxu1 %v6540_v12  ;;  %v6601_v11 = vld [vmem:[%s8393_s3 + $0x3a0] sm:$0xff]  }
 0x1ad   : > { %5947 = vmatprep.subr.bf16.mxu0 %v6862_v3  ;;  %5967 = vmatprep.subr.bf16.mxu1 %v6862_v3  ;;  %v6602_v12 = vld [vmem:[%s8393_s3 + $0x3e0] sm:$0xff]  }
 0x1b0   : > { %5948 = vmatpush3.bf16.msra.mxu0 %v6541_v13  ;;  %5968 = vmatpush3.bf16.msra.mxu1 %v6542_v14  ;;  %v6603_v13 = vld [vmem:[%s8393_s3 + $0x3a8] sm:$0xff]  }
 0x1b1   : > { %5949 = vmatprep.subr.bf16.mxu0 %v6862_v3  ;;  %5969 = vmatprep.subr.bf16.mxu1 %v6862_v3  ;;  %v6604_v14 = vld [vmem:[%s8393_s3 + $0x3e8] sm:$0xff]  }
 0x1b4   : > { %5950 = vmatpush3.bf16.msra.mxu0 %v6543_v15  ;;  %5970 = vmatpush3.bf16.msra.mxu1 %v6544_v16 }
 0x1b5   : > { %5975 = vmatprep.subr.bf16.mxu0 %v6862_v3  ;;  %5995 = vmatprep.subr.bf16.mxu1 %v6862_v3 }
 0x1b7   : > { %5952 = vmatmul.mubr.bf16.vlgmr.msra.gmra.mrb[12].mxu0 %v7074_v33  ;;  %5972 = vmatmul.mubr.bf16.vlgmr.msra.gmra.mrb[12].mxu1 %v7074_v33 }
 0x1b8   : > { %5976 = vmatpush3.bf16.msra.mxu0 %v6545_v17  ;;  %5996 = vmatpush3.bf16.msra.mxu1 %v6546_v18 }
 0x1b9   : > { %5977 = vmatprep.subr.bf16.mxu0 %v6862_v3  ;;  %5997 = vmatprep.subr.bf16.mxu1 %v6862_v3 }
 0x1ba   : > { %5991 = vmatprep.mubr.msk.bf16.mxu0 %vm6863_vm0, %v6862_v3  ;;  %6011 = vmatprep.mubr.msk.bf16.mxu1 %vm6863_vm0, %v6862_v3 }
 0x1bc   : > { %5978 = vmatpush3.bf16.msra.mxu0 %v6547_v19  ;;  %5998 = vmatpush3.bf16.msra.mxu1 %v6548_v20 }
 0x1bd   : > { %5979 = vmatprep.subr.bf16.mxu0 %v6862_v3  ;;  %5999 = vmatprep.subr.bf16.mxu1 %v6862_v3 }
 0x1c0   : > { %5980 = vmatpush3.bf16.msra.mxu0 %v6549_v21  ;;  %6000 = vmatpush3.bf16.msra.mxu1 %v6550_v22  ;;  %v6605_v21 = vld [vmem:[%s8393_s3 + $0x3b0] sm:$0xff]  }
 0x1c1   : > { %5981 = vmatprep.subr.bf16.mxu0 %v6862_v3  ;;  %6001 = vmatprep.subr.bf16.mxu1 %v6862_v3  ;;  %v6606_v22 = vld [vmem:[%s8393_s3 + $0x3f0] sm:$0xff]  }
 0x1c4   : > { %5982 = vmatpush3.bf16.msra.mxu0 %v6551_v23  ;;  %6002 = vmatpush3.bf16.msra.mxu1 %v6552_v24 }
 0x1c5   : > { %5983 = vmatprep.subr.bf16.mxu0 %v6862_v3  ;;  %6003 = vmatprep.subr.bf16.mxu1 %v6862_v3 }
 0x1c8   : > { %5984 = vmatpush3.bf16.msra.mxu0 %v6553_v25  ;;  %6004 = vmatpush3.bf16.msra.mxu1 %v6554_v26  ;;  %v6607_v25 = vld [vmem:[%s8393_s3 + $0x3b8] sm:$0xff]  }
 0x1c9   : > { %5985 = vmatprep.subr.bf16.mxu0 %v6862_v3  ;;  %6005 = vmatprep.subr.bf16.mxu1 %v6862_v3  ;;  %v6608_v26 = vld [vmem:[%s8393_s3 + $0x3f8] sm:$0xff]  }
 0x1cc   : > { %5986 = vmatpush3.bf16.msra.mxu0 %v6555_v27  ;;  %6006 = vmatpush3.bf16.msra.mxu1 %v6556_v28  ;;  %v6609_v27 = vld [vmem:[%s8393_s3 + $0x400] sm:$0xff]  }
 0x1cd   : > { %5987 = vmatprep.subr.bf16.mxu0 %v6862_v3  ;;  %6007 = vmatprep.subr.bf16.mxu1 %v6862_v3  ;;  %v6610_v28 = vld [vmem:[%s8393_s3 + $0x440] sm:$0xff]  }
 0x1d0   : > { %5988 = vmatpush3.bf16.msra.mxu0 %v6557_v29  ;;  %6008 = vmatpush3.bf16.msra.mxu1 %v6558_v30  ;;  %v6611_v29 = vld [vmem:[%s8393_s3 + $0x408] sm:$0xff]  }
 0x1d1   : > { %5989 = vmatprep.subr.bf16.mxu0 %v6862_v3  ;;  %6009 = vmatprep.subr.bf16.mxu1 %v6862_v3  ;;  %v6612_v30 = vld [vmem:[%s8393_s3 + $0x448] sm:$0xff]  }
 0x1d4   : > { %5990 = vmatpush3.bf16.msra.mxu0 %v6559_v31  ;;  %6010 = vmatpush3.bf16.msra.mxu1 %v6560_v32  ;;  %v6613_v31 = vld [vmem:[%s8393_s3 + $0x410] sm:$0xff]  }
 0x1d5   : > { %6015 = vmatprep.subr.bf16.mxu0 %v6862_v3  ;;  %6035 = vmatprep.subr.bf16.mxu1 %v6862_v3  ;;  %v6614_v32 = vld [vmem:[%s8393_s3 + $0x450] sm:$0xff]  }
 0x1d7   : > { %5992 = vmatmul.mubr.bf16.vlgmr.msra.gmra.mrb[16].mxu0 %v7074_v33  ;;  %6012 = vmatmul.mubr.bf16.vlgmr.msra.gmra.mrb[16].mxu1 %v7074_v33 }
 0x1d8   : > { %6016 = vmatpush3.bf16.msra.mxu0 %v6561_v34  ;;  %6036 = vmatpush3.bf16.msra.mxu1 %v6562_v35  ;;  %v6615_v34 = vld [vmem:[%s8393_s3 + $0x418] sm:$0xff]  }
 0x1d9   : > { %6017 = vmatprep.subr.bf16.mxu0 %v6862_v3  ;;  %6037 = vmatprep.subr.bf16.mxu1 %v6862_v3  ;;  %v6616_v35 = vld [vmem:[%s8393_s3 + $0x458] sm:$0xff]  }
 0x1da   : > { %6031 = vmatprep.mubr.msk.bf16.mxu0 %vm6863_vm0, %v6862_v3  ;;  %6051 = vmatprep.mubr.msk.bf16.mxu1 %vm6863_vm0, %v6862_v3 }
 0x1dc   : > { %6018 = vmatpush3.bf16.msra.mxu0 %v6563_v36  ;;  %6038 = vmatpush3.bf16.msra.mxu1 %v6564_v37  ;;  %v6617_v36 = vld [vmem:[%s8393_s3 + $0x420] sm:$0xff]  }
 0x1dd   : > { %6019 = vmatprep.subr.bf16.mxu0 %v6862_v3  ;;  %6039 = vmatprep.subr.bf16.mxu1 %v6862_v3  ;;  %v6618_v37 = vld [vmem:[%s8393_s3 + $0x460] sm:$0xff]  }
 0x1e0   : > { %6020 = vmatpush3.bf16.msra.mxu0 %v6565_v38  ;;  %6040 = vmatpush3.bf16.msra.mxu1 %v6566_v39  ;;  %v6619_v38 = vld [vmem:[%s8393_s3 + $0x428] sm:$0xff]  }
 0x1e1   : > { %6021 = vmatprep.subr.bf16.mxu0 %v6862_v3  ;;  %6041 = vmatprep.subr.bf16.mxu1 %v6862_v3  ;;  %v6620_v39 = vld [vmem:[%s8393_s3 + $0x468] sm:$0xff]  }
 0x1e4   : > { %6022 = vmatpush3.bf16.msra.mxu0 %v6567_v40  ;;  %6042 = vmatpush3.bf16.msra.mxu1 %v6568_v41 }
 0x1e5   : > { %6023 = vmatprep.subr.bf16.mxu0 %v6862_v3  ;;  %6043 = vmatprep.subr.bf16.mxu1 %v6862_v3 }
 0x1e8   : > { %6024 = vmatpush3.bf16.msra.mxu0 %v6569_v42  ;;  %6044 = vmatpush3.bf16.msra.mxu1 %v6570_v43 }
 0x1e9   : > { %6025 = vmatprep.subr.bf16.mxu0 %v6862_v3  ;;  %6045 = vmatprep.subr.bf16.mxu1 %v6862_v3 }
 0x1ec   : > { %6026 = vmatpush3.bf16.msra.mxu0 %v6571_v44  ;;  %6046 = vmatpush3.bf16.msra.mxu1 %v6572_v45 }
 0x1ed   : > { %6027 = vmatprep.subr.bf16.mxu0 %v6862_v3  ;;  %6047 = vmatprep.subr.bf16.mxu1 %v6862_v3 }
 0x1f0   : > { %6028 = vmatpush3.bf16.msra.mxu0 %v6573_v46  ;;  %6048 = vmatpush3.bf16.msra.mxu1 %v6574_v47  ;;  %v6621_v46 = vld [vmem:[%s8393_s3 + $0x430] sm:$0xff]  }
 0x1f1   : > { %6029 = vmatprep.subr.bf16.mxu0 %v6862_v3  ;;  %6049 = vmatprep.subr.bf16.mxu1 %v6862_v3  ;;  %v6622_v47 = vld [vmem:[%s8393_s3 + $0x470] sm:$0xff]  }
 0x1f4   : > { %6030 = vmatpush3.bf16.msra.mxu0 %v6575_v48  ;;  %6050 = vmatpush3.bf16.msra.mxu1 %v6576_v49 }
 0x1f5   : > { %6055 = vmatprep.subr.bf16.mxu0 %v6862_v3  ;;  %6075 = vmatprep.subr.bf16.mxu1 %v6862_v3 }
 0x1f7   : > { %6032 = vmatmul.mubr.bf16.vlgmr.msra.gmra.mrb[20].mxu0 %v7074_v33  ;;  %6052 = vmatmul.mubr.bf16.vlgmr.msra.gmra.mrb[20].mxu1 %v7074_v33 }
 0x1f8   : > { %6056 = vmatpush3.bf16.msra.mxu0 %v6577_v50  ;;  %6076 = vmatpush3.bf16.msra.mxu1 %v6578_v51  ;;  %v6623_v50 = vld [vmem:[%s8393_s3 + $0x438] sm:$0xff]  }
 0x1f9   : > { %6057 = vmatprep.subr.bf16.mxu0 %v6862_v3  ;;  %6077 = vmatprep.subr.bf16.mxu1 %v6862_v3  ;;  %v6624_v51 = vld [vmem:[%s8393_s3 + $0x478] sm:$0xff]  }
 0x1fa   : > { %6071 = vmatprep.mubr.msk.bf16.mxu0 %vm6863_vm0, %v6862_v3  ;;  %6091 = vmatprep.mubr.msk.bf16.mxu1 %vm6863_vm0, %v6862_v3 }
 0x1fc   : > { %6058 = vmatpush3.bf16.msra.mxu0 %v6579_v52  ;;  %6078 = vmatpush3.bf16.msra.mxu1 %v6580_v53  ;;  %v6625_v52 = vld [vmem:[%s8393_s3 + $0x480] sm:$0xff]  }
 0x1fd   : > { %6059 = vmatprep.subr.bf16.mxu0 %v6862_v3  ;;  %6079 = vmatprep.subr.bf16.mxu1 %v6862_v3  ;;  %v6626_v53 = vld [vmem:[%s8393_s3 + $0x4c0] sm:$0xff]  }
 0x200   : > { %6060 = vmatpush3.bf16.msra.mxu0 %v6581_v54  ;;  %6080 = vmatpush3.bf16.msra.mxu1 %v6582_v55  ;;  %v6627_v54 = vld [vmem:[%s8393_s3 + $0x488] sm:$0xff]  }
 0x201   : > { %6061 = vmatprep.subr.bf16.mxu0 %v6862_v3  ;;  %6081 = vmatprep.subr.bf16.mxu1 %v6862_v3  ;;  %v6628_v55 = vld [vmem:[%s8393_s3 + $0x4c8] sm:$0xff]  }
 0x204   : > { %6062 = vmatpush3.bf16.msra.mxu0 %v6583_v56  ;;  %6082 = vmatpush3.bf16.msra.mxu1 %v6584_v57  ;;  %v6629_v56 = vld [vmem:[%s8393_s3 + $0x490] sm:$0xff]  }
 0x205   : > { %6063 = vmatprep.subr.bf16.mxu0 %v6862_v3  ;;  %6083 = vmatprep.subr.bf16.mxu1 %v6862_v3  ;;  %v6630_v57 = vld [vmem:[%s8393_s3 + $0x4d0] sm:$0xff]  }
 0x208   : > { %6064 = vmatpush3.bf16.msra.mxu0 %v6585_v58  ;;  %6084 = vmatpush3.bf16.msra.mxu1 %v6586_v59  ;;  %v6631_v58 = vld [vmem:[%s8393_s3 + $0x498] sm:$0xff]  }
 0x209   : > { %6065 = vmatprep.subr.bf16.mxu0 %v6862_v3  ;;  %6085 = vmatprep.subr.bf16.mxu1 %v6862_v3  ;;  %v6632_v59 = vld [vmem:[%s8393_s3 + $0x4d8] sm:$0xff]  }
 0x20c   : > { %6066 = vmatpush3.bf16.msra.mxu0 %v6587_v60  ;;  %6086 = vmatpush3.bf16.msra.mxu1 %v6588_v61  ;;  %v6633_v60 = vld [vmem:[%s8393_s3 + $0x4a0] sm:$0xff]  }
 0x20d   : > { %6067 = vmatprep.subr.bf16.mxu0 %v6862_v3  ;;  %6087 = vmatprep.subr.bf16.mxu1 %v6862_v3  ;;  %v6634_v61 = vld [vmem:[%s8393_s3 + $0x4e0] sm:$0xff]  }
 0x210   : > { %6068 = vmatpush3.bf16.msra.mxu0 %v6589_v62  ;;  %6088 = vmatpush3.bf16.msra.mxu1 %v6590_v63  ;;  %v6635_v62 = vld [vmem:[%s8393_s3 + $0x4a8] sm:$0xff]  }
 0x211   : > { %6069 = vmatprep.subr.bf16.mxu0 %v6862_v3  ;;  %6089 = vmatprep.subr.bf16.mxu1 %v6862_v3  ;;  %v6636_v63 = vld [vmem:[%s8393_s3 + $0x4e8] sm:$0xff]  }
 0x214   : > { %6070 = vmatpush3.bf16.msra.mxu0 %v6591_v0  ;;  %6090 = vmatpush3.bf16.msra.mxu1 %v6592_v1 }
 0x215   : > { %6095 = vmatprep.subr.bf16.mxu0 %v6862_v3  ;;  %6115 = vmatprep.subr.bf16.mxu1 %v6862_v3 }
 0x217   : > { %6072 = vmatmul.mubr.bf16.vlgmr.msra.gmra.mrb[24].mxu0 %v7074_v33  ;;  %6092 = vmatmul.mubr.bf16.vlgmr.msra.gmra.mrb[24].mxu1 %v7074_v33 }
 0x218   : > { %6096 = vmatpush3.bf16.msra.mxu0 %v6593_v2  ;;  %6116 = vmatpush3.bf16.msra.mxu1 %v6594_v4 }
 0x219   : > { %6097 = vmatprep.subr.bf16.mxu0 %v6862_v3  ;;  %6117 = vmatprep.subr.bf16.mxu1 %v6862_v3 }
 0x21a   : > { %6111 = vmatprep.mubr.msk.bf16.mxu0 %vm6863_vm0, %v6862_v3  ;;  %6131 = vmatprep.mubr.msk.bf16.mxu1 %vm6863_vm0, %v6862_v3 }
 0x21c   : > { %6098 = vmatpush3.bf16.msra.mxu0 %v6595_v5  ;;  %6118 = vmatpush3.bf16.msra.mxu1 %v6596_v6 }
 0x21d   : > { %6099 = vmatprep.subr.bf16.mxu0 %v6862_v3  ;;  %6119 = vmatprep.subr.bf16.mxu1 %v6862_v3 }
 0x220   : > { %6100 = vmatpush3.bf16.msra.mxu0 %v6597_v7  ;;  %6120 = vmatpush3.bf16.msra.mxu1 %v6598_v8  ;;  %v6637_v7 = vld [vmem:[%s8393_s3 + $0x4b0] sm:$0xff]  }
 0x221   : > { %6101 = vmatprep.subr.bf16.mxu0 %v6862_v3  ;;  %6121 = vmatprep.subr.bf16.mxu1 %v6862_v3  ;;  %v6638_v8 = vld [vmem:[%s8393_s3 + $0x4f0] sm:$0xff]  }
 0x224   : > { %6102 = vmatpush3.bf16.msra.mxu0 %v6599_v9  ;;  %6122 = vmatpush3.bf16.msra.mxu1 %v6600_v10 }
 0x225   : > { %6103 = vmatprep.subr.bf16.mxu0 %v6862_v3  ;;  %6123 = vmatprep.subr.bf16.mxu1 %v6862_v3 }
 0x228   : > { %6104 = vmatpush3.bf16.msra.mxu0 %v6601_v11  ;;  %6124 = vmatpush3.bf16.msra.mxu1 %v6602_v12  ;;  %v6639_v11 = vld [vmem:[%s8393_s3 + $0x4b8] sm:$0xff]  }
 0x229   : > { %6105 = vmatprep.subr.bf16.mxu0 %v6862_v3  ;;  %6125 = vmatprep.subr.bf16.mxu1 %v6862_v3  ;;  %v6640_v12 = vld [vmem:[%s8393_s3 + $0x4f8] sm:$0xff]  }
 0x22a   : > { %v7542_v15 = vpop.f32.mrb[0].mxu0  ;;  %v7544_v16 = vpop.f32.mrb[0].mxu1 }
 0x22b   : > { %v5833_v17 = vpop.f32.mrb[1].mxu0  ;;  %v5853_v18 = vpop.f32.mrb[1].mxu1 }
 0x22c   : > { %6106 = vmatpush3.bf16.msra.mxu0 %v6603_v13  ;;  %6126 = vmatpush3.bf16.msra.mxu1 %v6604_v14  ;;  %v1104_v19 = vpop.f32.mrb[2].mxu0  ;;  %v1192_v20 = vpop.f32.mrb[2].mxu1  ;;  %v6641_v13 = vld [vmem:[%s8393_s3 + $0x500] sm:$0xff]   ;;  %v6643_v17 = vld [vmem:[%s8393_s3 + $0x508] sm:$0xff]  }
 0x22d   : > { %v5834_v23 = vpop.f32.mrb[3].mxu0  ;;  %v5854_v24 = vpop.f32.mrb[3].mxu1  ;;  %6107 = vmatprep.subr.bf16.mxu0 %v6862_v3  ;;  %6127 = vmatprep.subr.bf16.mxu1 %v6862_v3  ;;  %v6642_v14 = vld [vmem:[%s8393_s3 + $0x540] sm:$0xff]   ;;  %v6644_v18 = vld [vmem:[%s8393_s3 + $0x548] sm:$0xff]   ;;  %v6645_v19 = vld [vmem:[%s8393_s3 + $0x510] sm:$0xff]  }
 0x22e   : > { %v6646_v20 = vld [vmem:[%s8393_s3 + $0x550] sm:$0xff]   ;;  %v6649_v23 = vld [vmem:[%s8393_s3 + $0x520] sm:$0xff]  }
 0x22f   : > { %v6650_v24 = vld [vmem:[%s8393_s3 + $0x560] sm:$0xff]  }
 0x230   : > { %6108 = vmatpush3.bf16.msra.mxu0 %v6605_v21  ;;  %6128 = vmatpush3.bf16.msra.mxu1 %v6606_v22  ;;  %v6647_v21 = vld [vmem:[%s8393_s3 + $0x518] sm:$0xff]  }
 0x231   : > { %6109 = vmatprep.subr.bf16.mxu0 %v6862_v3  ;;  %6129 = vmatprep.subr.bf16.mxu1 %v6862_v3  ;;  %v6648_v22 = vld [vmem:[%s8393_s3 + $0x558] sm:$0xff]  }
 0x234   : > { %6110 = vmatpush3.bf16.msra.mxu0 %v6607_v25  ;;  %6130 = vmatpush3.bf16.msra.mxu1 %v6608_v26  ;;  %v6651_v25 = vld [vmem:[%s8393_s3 + $0x528] sm:$0xff]  }
 0x235   : > { %6135 = vmatprep.subr.bf16.mxu0 %v6862_v3  ;;  %6155 = vmatprep.subr.bf16.mxu1 %v6862_v3  ;;  %v6652_v26 = vld [vmem:[%s8393_s3 + $0x568] sm:$0xff]  }
 0x237   : > { %6112 = vmatmul.mubr.bf16.vlgmr.msra.gmra.mrb[28].mxu0 %v7074_v33  ;;  %6132 = vmatmul.mubr.bf16.vlgmr.msra.gmra.mrb[28].mxu1 %v7074_v33 }
 0x238   : > { %6136 = vmatpush3.bf16.msra.mxu0 %v6609_v27  ;;  %6156 = vmatpush3.bf16.msra.mxu1 %v6610_v28 }
 0x239   : > { %6137 = vmatprep.subr.bf16.mxu0 %v6862_v3  ;;  %6157 = vmatprep.subr.bf16.mxu1 %v6862_v3 }
 0x23a   : > { %6151 = vmatprep.mubr.msk.bf16.mxu0 %vm6863_vm0, %v6862_v3  ;;  %6171 = vmatprep.mubr.msk.bf16.mxu1 %vm6863_vm0, %v6862_v3 }
 0x23c   : > { %6138 = vmatpush3.bf16.msra.mxu0 %v6611_v29  ;;  %6158 = vmatpush3.bf16.msra.mxu1 %v6612_v30 }
 0x23d   : > { %6139 = vmatprep.subr.bf16.mxu0 %v6862_v3  ;;  %6159 = vmatprep.subr.bf16.mxu1 %v6862_v3 }
 0x240   : > { %6140 = vmatpush3.bf16.msra.mxu0 %v6613_v31  ;;  %6160 = vmatpush3.bf16.msra.mxu1 %v6614_v32 }
 0x241   : > { %6141 = vmatprep.subr.bf16.mxu0 %v6862_v3  ;;  %6161 = vmatprep.subr.bf16.mxu1 %v6862_v3 }
 0x244   : > { %6142 = vmatpush3.bf16.msra.mxu0 %v6615_v34  ;;  %6162 = vmatpush3.bf16.msra.mxu1 %v6616_v35  ;;  %v6653_v34 = vld [vmem:[%s8393_s3 + $0x530] sm:$0xff]  }
 0x245   : > { %6143 = vmatprep.subr.bf16.mxu0 %v6862_v3  ;;  %6163 = vmatprep.subr.bf16.mxu1 %v6862_v3  ;;  %v6654_v35 = vld [vmem:[%s8393_s3 + $0x570] sm:$0xff]  }
 0x248   : > { %6144 = vmatpush3.bf16.msra.mxu0 %v6617_v36  ;;  %6164 = vmatpush3.bf16.msra.mxu1 %v6618_v37 }
 0x249   : > { %6145 = vmatprep.subr.bf16.mxu0 %v6862_v3  ;;  %6165 = vmatprep.subr.bf16.mxu1 %v6862_v3 }
 0x24a   : > { %v7616_v40 = vpop.f32.mrb[4].mxu0  ;;  %v7618_v41 = vpop.f32.mrb[4].mxu1 }
 0x24b   : > { %v5873_v42 = vpop.f32.mrb[5].mxu0  ;;  %v5893_v43 = vpop.f32.mrb[5].mxu1 }
 0x24c   : > { %v1280_v44 = vpop.f32.mrb[6].mxu0  ;;  %v1368_v45 = vpop.f32.mrb[6].mxu1  ;;  %6146 = vmatpush3.bf16.msra.mxu0 %v6619_v38  ;;  %6166 = vmatpush3.bf16.msra.mxu1 %v6620_v39  ;;  %v6655_v38 = vld [vmem:[%s8393_s3 + $0x538] sm:$0xff]   ;;  %v6657_v42 = vld [vmem:[%s8393_s3 + $0x580] sm:$0xff]  }
 0x24d   : > { %v5874_v48 = vpop.f32.mrb[7].mxu0  ;;  %v5894_v49 = vpop.f32.mrb[7].mxu1  ;;  %6147 = vmatprep.subr.bf16.mxu0 %v6862_v3  ;;  %6167 = vmatprep.subr.bf16.mxu1 %v6862_v3  ;;  %v6656_v39 = vld [vmem:[%s8393_s3 + $0x578] sm:$0xff]   ;;  %v6658_v43 = vld [vmem:[%s8393_s3 + $0x5c0] sm:$0xff]   ;;  %v6659_v44 = vld [vmem:[%s8393_s3 + $0x588] sm:$0xff]  }
 0x24e   : > { %v6660_v45 = vld [vmem:[%s8393_s3 + $0x5c8] sm:$0xff]   ;;  %v6663_v48 = vld [vmem:[%s8393_s3 + $0x598] sm:$0xff]  }
 0x24f   : > { %v6664_v49 = vld [vmem:[%s8393_s3 + $0x5d8] sm:$0xff]  }
 0x250   : > { %6148 = vmatpush3.bf16.msra.mxu0 %v6621_v46  ;;  %6168 = vmatpush3.bf16.msra.mxu1 %v6622_v47  ;;  %v6661_v46 = vld [vmem:[%s8393_s3 + $0x590] sm:$0xff]  }
 0x251   : > { %6149 = vmatprep.subr.bf16.mxu0 %v6862_v3  ;;  %6169 = vmatprep.subr.bf16.mxu1 %v6862_v3  ;;  %v6662_v47 = vld [vmem:[%s8393_s3 + $0x5d0] sm:$0xff]  }
 0x254   : > { %6150 = vmatpush3.bf16.msra.mxu0 %v6623_v50  ;;  %6170 = vmatpush3.bf16.msra.mxu1 %v6624_v51  ;;  %v6665_v50 = vld [vmem:[%s8393_s3 + $0x5a0] sm:$0xff]  }
 0x255   : > { %6175 = vmatprep.subr.bf16.mxu0 %v6862_v3  ;;  %6195 = vmatprep.subr.bf16.mxu1 %v6862_v3  ;;  %v6666_v51 = vld [vmem:[%s8393_s3 + $0x5e0] sm:$0xff]  }
 0x257   : > { %6152 = vmatmul.mubr.bf16.vlgmr.msra.gmra.mrb[32].mxu0 %v7074_v33  ;;  %6172 = vmatmul.mubr.bf16.vlgmr.msra.gmra.mrb[32].mxu1 %v7074_v33 }
 0x258   : > { %6176 = vmatpush3.bf16.msra.mxu0 %v6625_v52  ;;  %6196 = vmatpush3.bf16.msra.mxu1 %v6626_v53  ;;  %v6667_v52 = vld [vmem:[%s8393_s3 + $0x5a8] sm:$0xff]  }
 0x259   : > { %6177 = vmatprep.subr.bf16.mxu0 %v6862_v3  ;;  %6197 = vmatprep.subr.bf16.mxu1 %v6862_v3  ;;  %v6668_v53 = vld [vmem:[%s8393_s3 + $0x5e8] sm:$0xff]  }
 0x25a   : > { %6191 = vmatprep.mubr.msk.bf16.mxu0 %vm6863_vm0, %v6862_v3  ;;  %6211 = vmatprep.mubr.msk.bf16.mxu1 %vm6863_vm0, %v6862_v3 }
 0x25c   : > { %6178 = vmatpush3.bf16.msra.mxu0 %v6627_v54  ;;  %6198 = vmatpush3.bf16.msra.mxu1 %v6628_v55 }
 0x25d   : > { %6179 = vmatprep.subr.bf16.mxu0 %v6862_v3  ;;  %6199 = vmatprep.subr.bf16.mxu1 %v6862_v3 }
 0x260   : > { %6180 = vmatpush3.bf16.msra.mxu0 %v6629_v56  ;;  %6200 = vmatpush3.bf16.msra.mxu1 %v6630_v57 }
 0x261   : > { %6181 = vmatprep.subr.bf16.mxu0 %v6862_v3  ;;  %6201 = vmatprep.subr.bf16.mxu1 %v6862_v3 }
 0x264   : > { %6182 = vmatpush3.bf16.msra.mxu0 %v6631_v58  ;;  %6202 = vmatpush3.bf16.msra.mxu1 %v6632_v59 }
 0x265   : > { %6183 = vmatprep.subr.bf16.mxu0 %v6862_v3  ;;  %6203 = vmatprep.subr.bf16.mxu1 %v6862_v3 }
 0x268   : > { %6184 = vmatpush3.bf16.msra.mxu0 %v6633_v60  ;;  %6204 = vmatpush3.bf16.msra.mxu1 %v6634_v61  ;;  %v6669_v60 = vld [vmem:[%s8393_s3 + $0x5b0] sm:$0xff]  }
 0x269   : > { %6185 = vmatprep.subr.bf16.mxu0 %v6862_v3  ;;  %6205 = vmatprep.subr.bf16.mxu1 %v6862_v3  ;;  %v6670_v61 = vld [vmem:[%s8393_s3 + $0x5f0] sm:$0xff]  }
 0x26a   : > { %v7690_v0 = vpop.f32.mrb[8].mxu0  ;;  %v7692_v1 = vpop.f32.mrb[8].mxu1 }
 0x26b   : > { %v5913_v2 = vpop.f32.mrb[9].mxu0  ;;  %v5933_v4 = vpop.f32.mrb[9].mxu1 }
 0x26c   : > { %v1456_v5 = vpop.f32.mrb[10].mxu0  ;;  %v1544_v6 = vpop.f32.mrb[10].mxu1  ;;  %6186 = vmatpush3.bf16.msra.mxu0 %v6635_v62  ;;  %6206 = vmatpush3.bf16.msra.mxu1 %v6636_v63  ;;  %v6671_v2 = vld [vmem:[%s8393_s3 + $0x5b8] sm:$0xff]  }
 0x26d   : > { %v5914_v9 = vpop.f32.mrb[11].mxu0  ;;  %v5934_v10 = vpop.f32.mrb[11].mxu1  ;;  %6187 = vmatprep.subr.bf16.mxu0 %v6862_v3  ;;  %6207 = vmatprep.subr.bf16.mxu1 %v6862_v3  ;;  %v6672_v4 = vld [vmem:[%s8393_s3 + $0x5f8] sm:$0xff]   ;;  %v5195_v5 = vld [vmem:[%s8394_s4 + $0x8] ss:$0 sm:$0xff] }
 0x26e   : > { %v5196_v6 = vld [vmem:[%s8394_s4 + $0x9] ss:$0 sm:$0xff] }
 0x270   : > { %6188 = vmatpush3.bf16.msra.mxu0 %v6637_v7  ;;  %6208 = vmatpush3.bf16.msra.mxu1 %v6638_v8 }
 0x271   : > { %6189 = vmatprep.subr.bf16.mxu0 %v6862_v3  ;;  %6209 = vmatprep.subr.bf16.mxu1 %v6862_v3 }
 0x274   : > { %6190 = vmatpush3.bf16.msra.mxu0 %v6639_v11  ;;  %6210 = vmatpush3.bf16.msra.mxu1 %v6640_v12  ;;  %v5187_v11 = vld [vmem:[%s8394_s4] ss:$0 sm:$0xff]  ;;  %v5188_v12 = vld [vmem:[%s8394_s4 + $0x1] ss:$0 sm:$0xff] }
 0x275   : > { %6215 = vmatprep.subr.bf16.mxu0 %v6862_v3  ;;  %6235 = vmatprep.subr.bf16.mxu1 %v6862_v3 }
 0x277   : > { %6192 = vmatmul.mubr.bf16.vlgmr.msra.gmra.mrb[36].mxu0 %v7074_v33  ;;  %6212 = vmatmul.mubr.bf16.vlgmr.msra.gmra.mrb[36].mxu1 %v7074_v33 }
 0x278   : > { %6216 = vmatpush3.bf16.msra.mxu0 %v6641_v13  ;;  %6236 = vmatpush3.bf16.msra.mxu1 %v6642_v14  ;;  %v1102_v14 = vadd.f32 %v5187_v11, %v7542_v15  ;;  %v5197_v15 = vld [vmem:[%s8394_s4 + $0xa] ss:$0 sm:$0xff] }
 0x279   : > { %6217 = vmatprep.subr.bf16.mxu0 %v6862_v3  ;;  %6237 = vmatprep.subr.bf16.mxu1 %v6862_v3 }
 0x27a   : > { %6231 = vmatprep.mubr.msk.bf16.mxu0 %vm6863_vm0, %v6862_v3  ;;  %6251 = vmatprep.mubr.msk.bf16.mxu1 %vm6863_vm0, %v6862_v3 }
 0x27c   : > { %6218 = vmatpush3.bf16.msra.mxu0 %v6643_v17  ;;  %6238 = vmatpush3.bf16.msra.mxu1 %v6644_v18  ;;  %v1190_v17 = vadd.f32 %v5188_v12, %v7544_v16  ;;  %v3131_v18 = vpack.c.bf16 %v1102_v14, %v1102_v14  ;;  %v5198_v16 = vld [vmem:[%s8394_s4 + $0xb] ss:$0 sm:$0xff] }
 0x27d   : > { %6219 = vmatprep.subr.bf16.mxu0 %v6862_v3  ;;  %6239 = vmatprep.subr.bf16.mxu1 %v6862_v3 }
 0x280   : > { %6220 = vmatpush3.bf16.msra.mxu0 %v6645_v19  ;;  %6240 = vmatpush3.bf16.msra.mxu1 %v6646_v20  ;;  %v3132_v19 = vpack.c.bf16 %v1190_v17, %v1190_v17  ;;  %v5193_v17 = vld [vmem:[%s8394_s4 + $0x6] ss:$0 sm:$0xff] }
 0x281   : > { %6221 = vmatprep.subr.bf16.mxu0 %v6862_v3  ;;  %6241 = vmatprep.subr.bf16.mxu1 %v6862_v3 }
 0x284   : > { %6222 = vmatpush3.bf16.msra.mxu0 %v6647_v21  ;;  %6242 = vmatpush3.bf16.msra.mxu1 %v6648_v22 }
 0x285   : > { %6223 = vmatprep.subr.bf16.mxu0 %v6862_v3  ;;  %6243 = vmatprep.subr.bf16.mxu1 %v6862_v3 }
 0x288   : > { %6224 = vmatpush3.bf16.msra.mxu0 %v6649_v23  ;;  %6244 = vmatpush3.bf16.msra.mxu1 %v6650_v24 }
 0x289   : > { %6225 = vmatprep.subr.bf16.mxu0 %v6862_v3  ;;  %6245 = vmatprep.subr.bf16.mxu1 %v6862_v3 }
 0x28a   : > { %v7764_v27 = vpop.f32.mrb[12].mxu0  ;;  %v7766_v28 = vpop.f32.mrb[12].mxu1 }
 0x28b   : > { %v5953_v29 = vpop.f32.mrb[13].mxu0  ;;  %v5973_v30 = vpop.f32.mrb[13].mxu1 }
 0x28c   : > { %v1632_v31 = vpop.f32.mrb[14].mxu0  ;;  %v1720_v32 = vpop.f32.mrb[14].mxu1  ;;  %6226 = vmatpush3.bf16.msra.mxu0 %v6651_v25  ;;  %6246 = vmatpush3.bf16.msra.mxu1 %v6652_v26 }
 0x28d   : > { %v5954_v36 = vpop.f32.mrb[15].mxu0  ;;  %v5974_v37 = vpop.f32.mrb[15].mxu1  ;;  %6227 = vmatprep.subr.bf16.mxu0 %v6862_v3  ;;  %6247 = vmatprep.subr.bf16.mxu1 %v6862_v3 }
 0x28e   : > { %v5190_v36 = vld [vmem:[%s8394_s4 + $0x3] ss:$0 sm:$0xff] }
 0x290   : > { %6228 = vmatpush3.bf16.msra.mxu0 %v6653_v34  ;;  %6248 = vmatpush3.bf16.msra.mxu1 %v6654_v35  ;;  %v5189_v35 = vld [vmem:[%s8394_s4 + $0x2] ss:$0 sm:$0xff] }
 0x291   : > { %6229 = vmatprep.subr.bf16.mxu0 %v6862_v3  ;;  %6249 = vmatprep.subr.bf16.mxu1 %v6862_v3 }
 0x294   : > { %6230 = vmatpush3.bf16.msra.mxu0 %v6655_v38  ;;  %6250 = vmatpush3.bf16.msra.mxu1 %v6656_v39  ;;  %v1278_v39 = vadd.f32 %v5189_v35, %v7616_v40  ;;  %v5199_v40 = vld [vmem:[%s8394_s4 + $0xc] ss:$0 sm:$0xff] }
 0x295   : > { %6255 = vmatprep.subr.bf16.mxu0 %v6862_v3  ;;  %6275 = vmatprep.subr.bf16.mxu1 %v6862_v3 }
 0x297   : > { %6232 = vmatmul.mubr.bf16.vlgmr.msra.gmra.mrb[40].mxu0 %v7074_v33  ;;  %6252 = vmatmul.mubr.bf16.vlgmr.msra.gmra.mrb[40].mxu1 %v7074_v33 }
 0x298   : > { %6256 = vmatpush3.bf16.msra.mxu0 %v6657_v42  ;;  %6276 = vmatpush3.bf16.msra.mxu1 %v6658_v43  ;;  %v1366_v42 = vadd.f32 %v5190_v36, %v7618_v41  ;;  %v3133_v43 = vpack.c.bf16 %v1278_v39, %v1278_v39  ;;  %v5200_v41 = vld [vmem:[%s8394_s4 + $0xd] ss:$0 sm:$0xff] }
 0x299   : > { %6257 = vmatprep.subr.bf16.mxu0 %v6862_v3  ;;  %6277 = vmatprep.subr.bf16.mxu1 %v6862_v3 }
 0x29a   : > { %6271 = vmatprep.mubr.msk.bf16.mxu0 %vm6863_vm0, %v6862_v3  ;;  %6291 = vmatprep.mubr.msk.bf16.mxu1 %vm6863_vm0, %v6862_v3 }
 0x29c   : > { %6258 = vmatpush3.bf16.msra.mxu0 %v6659_v44  ;;  %6278 = vmatpush3.bf16.msra.mxu1 %v6660_v45  ;;  %v3134_v44 = vpack.c.bf16 %v1366_v42, %v1366_v42 }
 0x29d   : > { %6259 = vmatprep.subr.bf16.mxu0 %v6862_v3  ;;  %6279 = vmatprep.subr.bf16.mxu1 %v6862_v3 }
 0x2a0   : > { %6260 = vmatpush3.bf16.msra.mxu0 %v6661_v46  ;;  %6280 = vmatpush3.bf16.msra.mxu1 %v6662_v47 }
 0x2a1   : > { %6261 = vmatprep.subr.bf16.mxu0 %v6862_v3  ;;  %6281 = vmatprep.subr.bf16.mxu1 %v6862_v3 }
 0x2a4   : > { %6262 = vmatpush3.bf16.msra.mxu0 %v6663_v48  ;;  %6282 = vmatpush3.bf16.msra.mxu1 %v6664_v49 }
 0x2a5   : > { %6263 = vmatprep.subr.bf16.mxu0 %v6862_v3  ;;  %6283 = vmatprep.subr.bf16.mxu1 %v6862_v3 }
 0x2a8   : > { %6264 = vmatpush3.bf16.msra.mxu0 %v6665_v50  ;;  %6284 = vmatpush3.bf16.msra.mxu1 %v6666_v51 }
 0x2a9   : > { %6265 = vmatprep.subr.bf16.mxu0 %v6862_v3  ;;  %6285 = vmatprep.subr.bf16.mxu1 %v6862_v3 }
 0x2aa   : > { %v1805_v54 = vpop.f32.mrb[16].mxu0  ;;  %v1893_v55 = vpop.f32.mrb[16].mxu1 }
 0x2ab   : > { %v5993_v56 = vpop.f32.mrb[17].mxu0  ;;  %v6013_v57 = vpop.f32.mrb[17].mxu1  ;;  %v1806_v7 = vadd.f32 %v5195_v5, %v1805_v54  ;;  %v1894_v8 = vadd.f32 %v5196_v6, %v1893_v55 }
 0x2ac   : > { %v1808_v58 = vpop.f32.mrb[18].mxu0  ;;  %v1896_v59 = vpop.f32.mrb[18].mxu1  ;;  %6266 = vmatpush3.bf16.msra.mxu0 %v6667_v52  ;;  %6286 = vmatpush3.bf16.msra.mxu1 %v6668_v53  ;;  %v5191_v57 = vld [vmem:[%s8394_s4 + $0x4] ss:$0 sm:$0xff] }
 0x2ad   : > { %v5994_v62 = vpop.f32.mrb[19].mxu0  ;;  %v6014_v63 = vpop.f32.mrb[19].mxu1  ;;  %6267 = vmatprep.subr.bf16.mxu0 %v6862_v3  ;;  %6287 = vmatprep.subr.bf16.mxu1 %v6862_v3  ;;  %v3139_v9 = vpack.c.bf16 %v1806_v7, %v1806_v7  ;;  %v3140_v10 = vpack.c.bf16 %v1894_v8, %v1894_v8  ;;  %v5192_v58 = vld [vmem:[%s8394_s4 + $0x5] ss:$0 sm:$0xff] }
 0x2ae   : > { %v1542_v62 = vadd.f32 %v5192_v58, %v7692_v1  ;;  %v5202_v1 = vld [vmem:[%s8394_s4 + $0xf] ss:$0 sm:$0xff] }
 0x2af   : > { %v3160_v13 = vsel %vm3155_vm1, %v3139_v9, 0 }
 0x2b0   : > { %6268 = vmatpush3.bf16.msra.mxu0 %v6669_v60  ;;  %6288 = vmatpush3.bf16.msra.mxu1 %v6670_v61  ;;  %v1454_v61 = vadd.f32 %v5191_v57, %v7690_v0  ;;  %v5201_v0 = vld [vmem:[%s8394_s4 + $0xe] ss:$0 sm:$0xff] }
 0x2b1   : > { %6269 = vmatprep.subr.bf16.mxu0 %v6862_v3  ;;  %6289 = vmatprep.subr.bf16.mxu1 %v6862_v3 }
 0x2b2   : > { %v3135_v63 = vpack.c.bf16 %v1454_v61, %v1454_v61 }
 0x2b4   : > { %6270 = vmatpush3.bf16.msra.mxu0 %v6671_v2  ;;  %6290 = vmatpush3.bf16.msra.mxu1 %v6672_v4  ;;  %v3136_v2 = vpack.c.bf16 %v1542_v62, %v1542_v62 }
 0x2b5   : > { %6295 = vmatprep.subr.bf16.mxu0 %v6862_v3  ;;  %6301 = vmatprep.subr.bf16.mxu1 %v6862_v3 }
 0x2b7   : > { %6272 = vmatmul.mubr.bf16.vlgmr.msra.gmra.mrb[44].mxu0 %v7074_v33  ;;  %6292 = vmatmul.mubr.bf16.vlgmr.msra.gmra.mrb[44].mxu1 %v7074_v33  ;;  %v3206_v33 = vsel %vm3155_vm1, %v3140_v10, 0 }
 0x2b8   : > { %6297 = vmatprep.mubr.msk.bf16.mxu0 %vm6863_vm0, %v6862_v3  ;;  %6303 = vmatprep.mubr.msk.bf16.mxu1 %vm6863_vm0, %v6862_v3 }
 0x2bd   : > { %6296 = vmatpush3.bf16.xpose.msra.mxu0 %v3160_v13  ;;  %6302 = vmatpush3.bf16.xpose.msra.mxu1 %v3206_v33 }
 0x2be   : > { %6307 = vmatprep.subr.bf16.mxu0 %v6862_v3  ;;  %6313 = vmatprep.subr.bf16.mxu1 %v6862_v3 }
 0x2c4   : > { %6298 = vmatmul.mubr.msk.bf16.vlgmr.msra.gmra.mrb[48].mxu0 %vm3155_vm1, %v3131_v18  ;;  %6304 = vmatmul.mubr.msk.bf16.vlgmr.msra.gmra.mrb[48].mxu1 %vm3155_vm1, %v3132_v19  ;;  %v5194_v18 = vld [vmem:[%s8394_s4 + $0x7] ss:$0 sm:$0xff] }
 0x2c5   : > { %6309 = vmatprep.mubr.msk.bf16.mxu0 %vm6863_vm0, %v6862_v3  ;;  %6315 = vmatprep.mubr.msk.bf16.mxu1 %vm6863_vm0, %v6862_v3 }
 0x2ca   : > { %v1981_v20 = vpop.f32.mrb[20].mxu0  ;;  %v2069_v21 = vpop.f32.mrb[20].mxu1 }
 0x2cb   : > { %v1982_v22 = vadd.f32 %v5197_v15, %v1981_v20  ;;  %v2070_v23 = vadd.f32 %v5198_v16, %v2069_v21  ;;  %v6033_v24 = vpop.f32.mrb[21].mxu0  ;;  %v6053_v25 = vpop.f32.mrb[21].mxu1  ;;  %v1630_v16 = vadd.f32 %v5193_v17, %v7764_v27  ;;  %v1718_v20 = vadd.f32 %v5194_v18, %v7766_v28  ;;  %v5203_v27 = vld [vmem:[%s8394_s4 + $0x10] ss:$0 sm:$0xff]  ;;  %v5204_v28 = vld [vmem:[%s8394_s4 + $0x11] ss:$0 sm:$0xff] }
 0x2cc   : > { %v1984_v26 = vpop.f32.mrb[22].mxu0  ;;  %v2072_v29 = vpop.f32.mrb[22].mxu1 }
 0x2cd   : > { %v3141_v30 = vpack.c.bf16 %v1982_v22, %v1982_v22  ;;  %v3142_v31 = vpack.c.bf16 %v2070_v23, %v2070_v23  ;;  %v6034_v32 = vpop.f32.mrb[23].mxu0  ;;  %v6054_v34 = vpop.f32.mrb[23].mxu1  ;;  %v3137_v21 = vpack.c.bf16 %v1630_v16, %v1630_v16  ;;  %v3138_v22 = vpack.c.bf16 %v1718_v20, %v1718_v20 }
 0x2cf   : > { %v3252_v37 = vsel %vm3155_vm1, %v3141_v30, 0  ;;  %v3298_v38 = vsel %vm3155_vm1, %v3142_v31, 0 }
 0x2d0   : > { %6308 = vmatpush3.bf16.xpose.msra.mxu0 %v3252_v37  ;;  %6314 = vmatpush3.bf16.xpose.msra.mxu1 %v3298_v38 }
 0x2d1   : > { %6319 = vmatprep.subr.bf16.mxu0 %v6862_v3  ;;  %6325 = vmatprep.subr.bf16.mxu1 %v6862_v3 }
 0x2d7   : > { %6310 = vmatmul.mubr.msk.bf16.vlgmr.msra.gmra.mrb[52].mxu0 %vm3155_vm1, %v3133_v43  ;;  %6316 = vmatmul.mubr.msk.bf16.vlgmr.msra.gmra.mrb[52].mxu1 %vm3155_vm1, %v3134_v44 }
 0x2d8   : > { %6321 = vmatprep.mubr.msk.bf16.mxu0 %vm6863_vm0, %v6862_v3  ;;  %6327 = vmatprep.mubr.msk.bf16.mxu1 %vm6863_vm0, %v6862_v3 }
 0x2ea   : > { %v2157_v45 = vpop.f32.mrb[24].mxu0  ;;  %v2245_v46 = vpop.f32.mrb[24].mxu1 }
 0x2eb   : > { %v2158_v47 = vadd.f32 %v5199_v40, %v2157_v45  ;;  %v2246_v48 = vadd.f32 %v5200_v41, %v2245_v46  ;;  %v6073_v49 = vpop.f32.mrb[25].mxu0  ;;  %v6093_v50 = vpop.f32.mrb[25].mxu1 }
 0x2ec   : > { %v2160_v51 = vpop.f32.mrb[26].mxu0  ;;  %v2248_v52 = vpop.f32.mrb[26].mxu1 }
 0x2ed   : > { %v3143_v53 = vpack.c.bf16 %v2158_v47, %v2158_v47  ;;  %v3144_v54 = vpack.c.bf16 %v2246_v48, %v2246_v48  ;;  %v6074_v55 = vpop.f32.mrb[27].mxu0  ;;  %v6094_v56 = vpop.f32.mrb[27].mxu1 }
 0x2ef   : > { %v3344_v59 = vsel %vm3155_vm1, %v3143_v53, 0  ;;  %v3390_v60 = vsel %vm3155_vm1, %v3144_v54, 0 }
 0x2f0   : > { %6320 = vmatpush3.bf16.xpose.msra.mxu0 %v3344_v59  ;;  %6326 = vmatpush3.bf16.xpose.msra.mxu1 %v3390_v60 }
 0x2f1   : > { %6331 = vmatprep.subr.bf16.mxu0 %v6862_v3  ;;  %6337 = vmatprep.subr.bf16.mxu1 %v6862_v3 }
 0x2f7   : > { %6322 = vmatmul.mubr.msk.bf16.vlgmr.msra.gmra.mrb[56].mxu0 %vm3155_vm1, %v3135_v63  ;;  %6328 = vmatmul.mubr.msk.bf16.vlgmr.msra.gmra.mrb[56].mxu1 %vm3155_vm1, %v3136_v2 }
 0x2f8   : > { %6333 = vmatprep.mubr.msk.bf16.mxu0 %vm6863_vm0, %v6862_v3  ;;  %6339 = vmatprep.mubr.msk.bf16.mxu1 %vm6863_vm0, %v6862_v3 }
 0x30a   : > { %v2333_v4 = vpop.f32.mrb[28].mxu0  ;;  %v2421_v5 = vpop.f32.mrb[28].mxu1 }
 0x30b   : > { %v2334_v6 = vadd.f32 %v5201_v0, %v2333_v4  ;;  %v2422_v7 = vadd.f32 %v5202_v1, %v2421_v5  ;;  %v6113_v8 = vpop.f32.mrb[29].mxu0  ;;  %v6133_v9 = vpop.f32.mrb[29].mxu1 }
 0x30c   : > { %v2336_v10 = vpop.f32.mrb[30].mxu0  ;;  %v2424_v11 = vpop.f32.mrb[30].mxu1 }
 0x30d   : > { %v3145_v12 = vpack.c.bf16 %v2334_v6, %v2334_v6  ;;  %v3146_v13 = vpack.c.bf16 %v2422_v7, %v2422_v7  ;;  %v6114_v33 = vpop.f32.mrb[31].mxu0  ;;  %v6134_v14 = vpop.f32.mrb[31].mxu1 }
 0x30f   : > { %v3436_v19 = vsel %vm3155_vm1, %v3145_v12, 0  ;;  %v3482_v15 = vsel %vm3155_vm1, %v3146_v13, 0 }
 0x310   : > { %6332 = vmatpush3.bf16.xpose.msra.mxu0 %v3436_v19  ;;  %6338 = vmatpush3.bf16.xpose.msra.mxu1 %v3482_v15 }
 0x311   : > { %6343 = vmatprep.subr.bf16.mxu0 %v6862_v3  ;;  %6349 = vmatprep.subr.bf16.mxu1 %v6862_v3 }
 0x317   : > { %6334 = vmatmul.mubr.msk.bf16.vlgmr.msra.gmra.mrb[60].mxu0 %vm3155_vm1, %v3137_v21  ;;  %6340 = vmatmul.mubr.msk.bf16.vlgmr.msra.gmra.mrb[60].mxu1 %vm3155_vm1, %v3138_v22 }
 0x318   : > { %6345 = vmatprep.mubr.msk.bf16.mxu0 %vm6863_vm0, %v6862_v3  ;;  %6351 = vmatprep.mubr.msk.bf16.mxu1 %vm6863_vm0, %v6862_v3 }
 0x32a   : > { %v2509_v23 = vpop.f32.mrb[32].mxu0  ;;  %v2597_v24 = vpop.f32.mrb[32].mxu1 }
 0x32b   : > { %v2510_v25 = vadd.f32 %v5203_v27, %v2509_v23  ;;  %v2598_v26 = vadd.f32 %v5204_v28, %v2597_v24  ;;  %v6153_v29 = vpop.f32.mrb[33].mxu0  ;;  %v6173_v30 = vpop.f32.mrb[33].mxu1 }
 0x32c   : > { %v2512_v31 = vpop.f32.mrb[34].mxu0  ;;  %v2600_v32 = vpop.f32.mrb[34].mxu1 }
 0x32d   : > { %v3147_v34 = vpack.c.bf16 %v2510_v25, %v2510_v25  ;;  %v3148_v35 = vpack.c.bf16 %v2598_v26, %v2598_v26  ;;  %v6154_v36 = vpop.f32.mrb[35].mxu0  ;;  %v6174_v37 = vpop.f32.mrb[35].mxu1 }
 0x32f   : > { %v3634_v38 = vsel %vm3632_vm2, %v3147_v34, 0  ;;  %v3680_v39 = vsel %vm3632_vm2, %v3148_v35, 0 }
 0x330   : > { %6344 = vmatpush3.bf16.msra.mxu0 %v3634_v38  ;;  %6350 = vmatpush3.bf16.msra.mxu1 %v3680_v39 }
 0x331   : > { %6355 = vmatprep.subr.bf16.mxu0 %v6862_v3  ;;  %6361 = vmatprep.subr.bf16.mxu1 %v6862_v3 }
 0x34a   : > { %v7968_v42 = vpop.f32.mrb[36].mxu0  ;;  %v7970_v43 = vpop.f32.mrb[36].mxu1 }
 0x34b   : > { %v6193_v44 = vpop.f32.mrb[37].mxu0  ;;  %v6213_v40 = vpop.f32.mrb[37].mxu1 }
 0x34c   : > { %v2688_v41 = vpop.f32.mrb[38].mxu0  ;;  %v2776_v45 = vpop.f32.mrb[38].mxu1 }
 0x34d   : > { %v6194_v46 = vpop.f32.mrb[39].mxu0  ;;  %v6214_v47 = vpop.f32.mrb[39].mxu1 }
 0x36a   : > { %v7972_v48 = vpop.f32.mrb[40].mxu0  ;;  %v7974_v49 = vpop.f32.mrb[40].mxu1 }
 0x36b   : > { %v6233_v50 = vpop.f32.mrb[41].mxu0  ;;  %v6253_v51 = vpop.f32.mrb[41].mxu1 }
 0x36c   : > { %v2864_v52 = vpop.f32.mrb[42].mxu0  ;;  %v2952_v53 = vpop.f32.mrb[42].mxu1 }
 0x36d   : > { %v6234_v54 = vpop.f32.mrb[43].mxu0  ;;  %v6254_v55 = vpop.f32.mrb[43].mxu1 }
 0x38a   : > { %v7976_v56 = vpop.f32.mrb[44].mxu0  ;;  %v7978_v57 = vpop.f32.mrb[44].mxu1 }
 0x38b   : > { %v6273_v58 = vpop.f32.mrb[45].mxu0  ;;  %v6293_v59 = vpop.f32.mrb[45].mxu1 }
 0x38c   : > { %v3040_v60 = vpop.f32.mrb[46].mxu0  ;;  %v3128_v61 = vpop.f32.mrb[46].mxu1 }
 0x38d   : > { %v6274_v62 = vpop.f32.mrb[47].mxu0  ;;  %v6294_v63 = vpop.f32.mrb[47].mxu1 }
 0x397   : > { %v3196_v2 = vpop.f32.mrb[48].mxu0  ;;  %v3242_v0 = vpop.f32.mrb[48].mxu1 }
 0x398   : > { %v3524_v1 = vmul.f32 0.25, %v3196_v2  ;;  %v6299_v4 = vpop.f32.mrb[49].mxu0  ;;  %v6305_v5 = vpop.f32.mrb[49].mxu1  ;;  %v3525_v8 = vmul.f32 0.25, %v3242_v0 }
 0x399   : > { %v3199_v6 = vpop.f32.mrb[50].mxu0  ;;  %v3245_v7 = vpop.f32.mrb[50].mxu1 }
 0x39a   : > { %v6300_v9 = vpop.f32.mrb[51].mxu0  ;;  %v6306_v10 = vpop.f32.mrb[51].mxu1  ;;  %v3533_v11 = vsel %vm3532_vm3, %v3524_v1, -inf  ;;  %v3536_v12 = vsel %vm3532_vm3, %v3525_v8, -inf }
 0x39b   : > { %3534 = vmax.xlane.f32.xlu1 %v3533_v11 }
 0x39f   : > { %3537 = vmax.xlane.f32.xlu1 %v3536_v12 }
 0x3aa   : > { %v3288_v13 = vpop.f32.mrb[52].mxu0  ;;  %v3334_v33 = vpop.f32.mrb[52].mxu1 }
 0x3ab   : > { %v3526_v14 = vmul.f32 0.25, %v3288_v13  ;;  %v3527_v17 = vmul.f32 0.25, %v3334_v33  ;;  %v6311_v18 = vpop.f32.mrb[53].mxu0  ;;  %v6317_v19 = vpop.f32.mrb[53].mxu1 }
 0x3ac   : > { %v3291_v15 = vpop.f32.mrb[54].mxu0  ;;  %v3337_v16 = vpop.f32.mrb[54].mxu1 }
 0x3ad   : > { %v6312_v20 = vpop.f32.mrb[55].mxu0  ;;  %v6318_v21 = vpop.f32.mrb[55].mxu1  ;;  %v3542_v22 = vsel %vm3532_vm3, %v3527_v17, -inf  ;;  %v3539_v27 = vsel %vm3532_vm3, %v3526_v14, -inf }
 0x3ae   : > { %3543 = vmax.xlane.f32.xlu1 %v3542_v22  ;;  %3540 = vmax.xlane.f32.xlu0 %v3539_v27 }
 0x3ca   : > { %v3380_v28 = vpop.f32.mrb[56].mxu0  ;;  %v3426_v23 = vpop.f32.mrb[56].mxu1 }
 0x3cb   : > { %v3528_v24 = vmul.f32 0.25, %v3380_v28  ;;  %v3529_v25 = vmul.f32 0.25, %v3426_v23  ;;  %v6323_v26 = vpop.f32.mrb[57].mxu0  ;;  %v6329_v29 = vpop.f32.mrb[57].mxu1 }
 0x3cc   : > { %v3383_v30 = vpop.f32.mrb[58].mxu0  ;;  %v3429_v31 = vpop.f32.mrb[58].mxu1 }
 0x3cd   : > { %v6324_v32 = vpop.f32.mrb[59].mxu0  ;;  %v6330_v34 = vpop.f32.mrb[59].mxu1  ;;  %v3548_v35 = vsel %vm3532_vm3, %v3529_v25, -inf  ;;  %v3545_v36 = vsel %vm3532_vm3, %v3528_v24, -inf }
 0x3ce   : > { %3549 = vmax.xlane.f32.xlu1 %v3548_v35  ;;  %3546 = vmax.xlane.f32.xlu0 %v3545_v36  ;;  %v5205_v34 = vld [vmem:[%s8394_s4 + $0x12] ss:$0 sm:$0xff]  ;;  %v5206_v36 = vld [vmem:[%s8394_s4 + $0x13] ss:$0 sm:$0xff] }
 0x3cf   : > { %v2686_v35 = vadd.f32 %v5205_v34, %v7968_v42  ;;  %v6675_v34 = vld [vmem:[%s8395_s5 + $0x10] sm:$0xff]  }
 0x3ea   : > { %v3472_v37 = vpop.f32.mrb[60].mxu0  ;;  %v3518_v38 = vpop.f32.mrb[60].mxu1 }
 0x3eb   : > { %v3530_v39 = vmul.f32 0.25, %v3472_v37  ;;  %v3531_v44 = vmul.f32 0.25, %v3518_v38  ;;  %v6335_v40 = vpop.f32.mrb[61].mxu0  ;;  %v6341_v41 = vpop.f32.mrb[61].mxu1  ;;  %v3149_v38 = vpack.c.bf16 %v2686_v35, %v2686_v35 }
 0x3ec   : > { %v3475_v45 = vpop.f32.mrb[62].mxu0  ;;  %v3521_v46 = vpop.f32.mrb[62].mxu1 }
 0x3ed   : > { %v6336_v47 = vpop.f32.mrb[63].mxu0  ;;  %v6342_v50 = vpop.f32.mrb[63].mxu1  ;;  %v3554_v51 = vsel %vm3532_vm3, %v3531_v44, -inf  ;;  %v3551_v52 = vsel %vm3532_vm3, %v3530_v39, -inf  ;;  %v3726_v45 = vsel %vm3632_vm2, %v3149_v38, 0 }
 0x3ee   : > { %3555 = vmax.xlane.f32.xlu1 %v3554_v51  ;;  %3552 = vmax.xlane.f32.xlu0 %v3551_v52  ;;  %v5208_v52 = vld [vmem:[%s8394_s4 + $0x15] ss:$0 sm:$0xff] }
 0x428   : > { %v3535_v53 = vpop.xlane.xlu1 %3534 }
 0x429   : > { %v3557_v54 = vsub.f32 %v3524_v1, %v3535_v53  ;;  %v5207_v53 = vld [vmem:[%s8394_s4 + $0x14] ss:$0 sm:$0xff] }
 0x42b   : > { %v3565_v55 = vmul.f32 1.442695, %v3557_v54  ;;  %v2950_v54 = vadd.f32 %v5208_v52, %v7974_v49 }
 0x42c   : > { %v3538_v58 = vpop.xlane.xlu1 %3537 }
 0x42d   : > { %6763 = vpow2.f32 %v3565_v55  ;;  %v3558_v59 = vsub.f32 %v3525_v8, %v3538_v58  ;;  %v2862_v55 = vadd.f32 %v5207_v53, %v7972_v48 }
 0x42f   : > { %v3567_v60 = vmul.f32 1.442695, %v3558_v59 }
 0x431   : > { %6765 = vpow2.f32 %v3567_v60  ;;  %v3152_v60 = vpack.c.bf16 %v2950_v54, %v2950_v54  ;;  %v6680_v54 = vld [vmem:[%s8395_s5 + $0x38] sm:$0xff]  }
 0x437   : > { %v6764_v61 = vpop.eup %6763 }
 0x438   : > { %v3581_v62 = vsel %vm3532_vm3, %v6764_v61, 0.0 }
 0x439   : > { %3582 = vadd.xlane.f32.xlu0 %v3581_v62  ;;  %v3151_v62 = vpack.c.bf16 %v2862_v55, %v2862_v55 }
 0x43b   : > { %v6766_v63 = vpop.eup %6765  ;;  %v3544_v2 = vpop.xlane.xlu1 %3543 }
 0x43c   : > { %v3541_v0 = vpop.xlane.xlu0 %3540  ;;  %v3560_v4 = vsub.f32 %v3527_v17, %v3544_v2  ;;  %v3584_v6 = vsel %vm3532_vm3, %v6766_v63, 0.0 }
 0x43d   : > { %v3559_v5 = vsub.f32 %v3526_v14, %v3541_v0  ;;  %3585 = vadd.xlane.f32.xlu1 %v3584_v6  ;;  %v5210_v6 = vld [vmem:[%s8394_s4 + $0x17] ss:$0 sm:$0xff] }
 0x43e   : > { %v3571_v7 = vmul.f32 1.442695, %v3560_v4  ;;  %v3864_v4 = vsel %vm3632_vm2, %v3152_v60, 0  ;;  %v6679_v60 = vld [vmem:[%s8395_s5 + $0x30] sm:$0xff]  }
 0x43f   : > { %v3569_v1 = vmul.f32 1.442695, %v3559_v5  ;;  %v3818_v5 = vsel %vm3632_vm2, %v3151_v62, 0 }
 0x440   : > { %6767 = vpow2.f32 %v3571_v7  ;;  %v5209_v7 = vld [vmem:[%s8394_s4 + $0x16] ss:$0 sm:$0xff] }
 0x441   : > { %6769 = vpow2.f32 %v3569_v1  ;;  %v3126_v1 = vadd.f32 %v5210_v6, %v7978_v57 }
 0x44a   : > { %v7990_v9 = vpop.eup %6767 }
 0x44b   : > { %v7992_v8 = vpop.eup %6769  ;;  %v3590_v10 = vsel %vm3532_vm3, %v7990_v9, 0.0 }
 0x44c   : > { %3591 = vadd.xlane.f32.xlu1 %v3590_v10  ;;  %v3587_v11 = vsel %vm3532_vm3, %v7992_v8, 0.0 }
 0x44d   : > { %3588 = vadd.xlane.f32.xlu0 %v3587_v11  ;;  %v3154_v11 = vpack.c.bf16 %v3126_v1, %v3126_v1 }
 0x45b   : > { %v3550_v12 = vpop.xlane.xlu1 %3549  ;;  %v3547_v13 = vpop.xlane.xlu0 %3546 }
 0x45c   : > { %v3562_v33 = vsub.f32 %v3529_v25, %v3550_v12  ;;  %v3561_v14 = vsub.f32 %v3528_v24, %v3547_v13 }
 0x45e   : > { %v3575_v17 = vmul.f32 1.442695, %v3562_v33  ;;  %v3573_v18 = vmul.f32 1.442695, %v3561_v14 }
 0x460   : > { %6771 = vpow2.f32 %v3575_v17 }
 0x461   : > { %6773 = vpow2.f32 %v3573_v18  ;;  %v3956_v18 = vsel %vm3632_vm2, %v3154_v11, 0 }
 0x46a   : > { %v7998_v19 = vpop.eup %6771 }
 0x46b   : > { %v8000_v15 = vpop.eup %6773  ;;  %v3596_v16 = vsel %vm3532_vm3, %v7998_v19, 0.0 }
 0x46c   : > { %3597 = vadd.xlane.f32.xlu1 %v3596_v16  ;;  %v3593_v20 = vsel %vm3532_vm3, %v8000_v15, 0.0 }
 0x46d   : > { %3594 = vadd.xlane.f32.xlu0 %v3593_v20 }
 0x47b   : > { %v3556_v21 = vpop.xlane.xlu1 %3555  ;;  %v3553_v22 = vpop.xlane.xlu0 %3552 }
 0x47c   : > { %v3564_v27 = vsub.f32 %v3531_v44, %v3556_v21  ;;  %v3563_v28 = vsub.f32 %v3530_v39, %v3553_v22  ;;  %v2774_v39 = vadd.f32 %v5206_v36, %v7970_v43 }
 0x47e   : > { %v3579_v23 = vmul.f32 1.442695, %v3564_v27  ;;  %v3577_v24 = vmul.f32 1.442695, %v3563_v28  ;;  %v3150_v46 = vpack.c.bf16 %v2774_v39, %v2774_v39  ;;  %v6673_v28 = vld [vmem:[%s8395_s5] sm:$0xff]  }
 0x480   : > { %6775 = vpow2.f32 %v3579_v23  ;;  %v3772_v51 = vsel %vm3632_vm2, %v3150_v46, 0  ;;  %v6674_v23 = vld [vmem:[%s8395_s5 + $0x8] sm:$0xff]   ;;  %v6677_v46 = vld [vmem:[%s8395_s5 + $0x20] sm:$0xff]  }
 0x481   : > { %6777 = vpow2.f32 %v3577_v24 }
 0x48a   : > { %v8006_v25 = vpop.eup %6775 }
 0x48b   : > { %v8008_v26 = vpop.eup %6777  ;;  %v3602_v29 = vsel %vm3532_vm3, %v8006_v25, 0.0 }
 0x48c   : > { %3603 = vadd.xlane.f32.xlu1 %v3602_v29  ;;  %v3599_v30 = vsel %vm3532_vm3, %v8008_v26, 0.0 }
 0x48d   : > { %3600 = vadd.xlane.f32.xlu0 %v3599_v30 }
 0x4c6   : > { %v3583_v31 = vpop.xlane.xlu0 %3582 }
 0x4c7   : > { %6779 = vrcp.f32 %v3583_v31 }
 0x4ca   : > { %v3586_v32 = vpop.xlane.xlu1 %3585 }
 0x4cb   : > { %6781 = vrcp.f32 %v3586_v32 }
 0x4d1   : > { %v6780_v37 = vpop.eup %6779 }
 0x4d2   : > { %v3613_v44 = vmul.f32 %v6780_v37, %v6764_v61 }
 0x4d4   : > { %v3621_v40 = vpack.c.bf16 %v3613_v44, %v3613_v44  ;;  %v6678_v44 = vld [vmem:[%s8395_s5 + $0x28] sm:$0xff]  }
 0x4d5   : > { %v6782_v41 = vpop.eup %6781 }
 0x4d6   : > { %v3614_v47 = vmul.f32 %v6782_v41, %v6766_v63  ;;  %6346 = vmatmul.mubr.msk.bf16.vlgmr.msra.gmra.mrb[64].mxu0 %vm3532_vm3, %v3621_v40 }
 0x4d7   : > { %6356 = vmatpush3.bf16.msra.mxu0 %v3726_v45  ;;  %6357 = vmatprep.mubr.msk.bf16.mxu0 %vm6863_vm0, %v6862_v3 }
 0x4d8   : > { %v3622_v42 = vpack.c.bf16 %v3614_v47, %v3614_v47  ;;  %6367 = vmatprep.subr.bf16.mxu0 %v6862_v3 }
 0x4d9   : > { %v3592_v50 = vpop.xlane.xlu1 %3591 }
 0x4da   : > { %6783 = vrcp.f32 %v3592_v50  ;;  %v3589_v43 = vpop.xlane.xlu0 %3588  ;;  %6352 = vmatmul.mubr.msk.bf16.vlgmr.msra.gmra.mrb[64].mxu1 %vm3532_vm3, %v3622_v42 }
 0x4db   : > { %6785 = vrcp.f32 %v3589_v43  ;;  %6362 = vmatpush3.bf16.msra.mxu1 %v3772_v51  ;;  %6363 = vmatprep.mubr.msk.bf16.mxu1 %vm6863_vm0, %v6862_v3 }
 0x4dc   : > { %6373 = vmatprep.subr.bf16.mxu1 %v6862_v3 }
 0x4e4   : > { %v6784_v58 = vpop.eup %6783 }
 0x4e5   : > { %v6786_v59 = vpop.eup %6785  ;;  %v3616_v61 = vmul.f32 %v6784_v58, %v7990_v9  ;;  %v3038_v9 = vadd.f32 %v5209_v7, %v7976_v56 }
 0x4e6   : > { %v3615_v63 = vmul.f32 %v6786_v59, %v7992_v8 }
 0x4e7   : > { %v3624_v2 = vpack.c.bf16 %v3616_v61, %v3616_v61  ;;  %v3153_v13 = vpack.c.bf16 %v3038_v9, %v3038_v9 }
 0x4e8   : > { %v3623_v0 = vpack.c.bf16 %v3615_v63, %v3615_v63 }
 0x4e9   : > { %6364 = vmatmul.mubr.msk.bf16.vlgmr.msra.gmra.mrb[68].mxu1 %vm3532_vm3, %v3624_v2  ;;  %v3910_v16 = vsel %vm3632_vm2, %v3153_v13, 0 }
 0x4ea   : > { %6358 = vmatmul.mubr.msk.bf16.vlgmr.msra.gmra.mrb[68].mxu0 %vm3532_vm3, %v3623_v0  ;;  %6374 = vmatpush3.bf16.msra.mxu1 %v3864_v4 }
 0x4eb   : > { %6368 = vmatpush3.bf16.msra.mxu0 %v3818_v5  ;;  %6369 = vmatprep.mubr.msk.bf16.mxu0 %vm6863_vm0, %v6862_v3 }
 0x4ec   : > { %6375 = vmatprep.mubr.msk.bf16.mxu1 %vm6863_vm0, %v6862_v3  ;;  %6379 = vmatprep.subr.bf16.mxu0 %v6862_v3 }
 0x4ed   : > { %6385 = vmatprep.subr.bf16.mxu1 %v6862_v3 }
 0x4f9   : > { %v3598_v48 = vpop.xlane.xlu1 %3597 }
 0x4fa   : > { %6787 = vrcp.f32 %v3598_v48  ;;  %v3595_v49 = vpop.xlane.xlu0 %3594 }
 0x4fb   : > { %6789 = vrcp.f32 %v3595_v49 }
 0x504   : > { %v6788_v8 = vpop.eup %6787 }
 0x505   : > { %v6790_v10 = vpop.eup %6789  ;;  %v3618_v12 = vmul.f32 %v6788_v8, %v7998_v19 }
 0x506   : > { %v3617_v33 = vmul.f32 %v6790_v10, %v8000_v15 }
 0x507   : > { %v3626_v14 = vpack.c.bf16 %v3618_v12, %v3618_v12 }
 0x508   : > { %v3625_v17 = vpack.c.bf16 %v3617_v33, %v3617_v33 }
 0x509   : > { %6376 = vmatmul.mubr.msk.bf16.vlgmr.msra.gmra.mrb[72].mxu1 %vm3532_vm3, %v3626_v14 }
 0x50a   : > { %6370 = vmatmul.mubr.msk.bf16.vlgmr.msra.gmra.mrb[72].mxu0 %vm3532_vm3, %v3625_v17  ;;  %6386 = vmatpush3.bf16.msra.mxu1 %v3956_v18 }
 0x50b   : > { %6380 = vmatpush3.bf16.msra.mxu0 %v3910_v16  ;;  %6381 = vmatprep.mubr.msk.bf16.mxu0 %vm6863_vm0, %v6862_v3 }
 0x50c   : > { %6387 = vmatprep.mubr.msk.bf16.mxu1 %vm6863_vm0, %v6862_v3  ;;  %6397 = vmatprep.subr.bf16.mxu1 %v6862_v3 }
 0x50d   : > { %6391 = vmatprep.subr.bf16.mxu0 %v6862_v3 }
 0x519   : > { %v3604_v56 = vpop.xlane.xlu1 %3603 }
 0x51a   : > { %6791 = vrcp.f32 %v3604_v56  ;;  %v3601_v57 = vpop.xlane.xlu0 %3600 }
 0x51b   : > { %6793 = vrcp.f32 %v3601_v57 }
 0x524   : > { %v6792_v19 = vpop.eup %6791 }
 0x525   : > { %v6794_v15 = vpop.eup %6793  ;;  %v3620_v20 = vmul.f32 %v6792_v19, %v8006_v25  ;;  %v6676_v25 = vld [vmem:[%s8395_s5 + $0x18] sm:$0xff]  }
 0x526   : > { %v3619_v21 = vmul.f32 %v6794_v15, %v8008_v26 }
 0x527   : > { %v3628_v22 = vpack.c.bf16 %v3620_v20, %v3620_v20 }
 0x528   : > { %v3627_v27 = vpack.c.bf16 %v3619_v21, %v3619_v21 }
 0x529   : > { %6388 = vmatmul.mubr.msk.bf16.vlgmr.msra.gmra.mrb[76].mxu1 %vm3532_vm3, %v3628_v22 }
 0x52a   : > { %6382 = vmatmul.mubr.msk.bf16.vlgmr.msra.gmra.mrb[76].mxu0 %vm3532_vm3, %v3627_v27  ;;  %6399 = vmatprep.mubr.msk.bf16.mxu1 %vm6863_vm0, %v6862_v3 }
 0x52b   : > { %6398 = vmatpush3.bf16.msra.mxu1 %v6673_v28  ;;  %6393 = vmatprep.mubr.msk.bf16.mxu0 %vm6863_vm0, %v6862_v3 }
 0x52c   : > { %6409 = vmatprep.subr.bf16.mxu1 %v6862_v3  ;;  %6392 = vmatpush3.bf16.msra.mxu0 %v6674_v23 }
 0x52d   : > { %6403 = vmatprep.subr.bf16.mxu0 %v6862_v3 }
 0x5a9   : > { %v3670_v24 = vpop.f32.mrb[64].mxu0 }
 0x5aa   : > { %v4014_v26 = vpack.c.bf16 %v3670_v24, %v3670_v24  ;;  %v6347_v29 = vpop.f32.mrb[65].mxu0 }
 0x5ab   : > { %v3673_v30 = vpop.f32.mrb[66].mxu0 }
 0x5ac   : > { %v6348_v31 = vpop.f32.mrb[67].mxu0  ;;  %6400 = vmatmul.mubr.msk.bf16.vlgmr.msra.gmra.mrb[80].mxu1 %vm3155_vm1, %v4014_v26 }
 0x5ad   : > { %v3716_v32 = vpop.f32.mrb[64].mxu1  ;;  %6410 = vmatpush3.bf16.msra.mxu1 %v6676_v25  ;;  %6411 = vmatprep.mubr.msk.bf16.mxu1 %vm6863_vm0, %v6862_v3 }
 0x5ae   : > { %v4015_v35 = vpack.c.bf16 %v3716_v32, %v3716_v32  ;;  %v6353_v36 = vpop.f32.mrb[65].mxu1  ;;  %6421 = vmatprep.subr.bf16.mxu1 %v6862_v3 }
 0x5af   : > { %v3719_v37 = vpop.f32.mrb[66].mxu1 }
 0x5b0   : > { %v6354_v38 = vpop.f32.mrb[67].mxu1  ;;  %6394 = vmatmul.mubr.msk.bf16.vlgmr.msra.gmra.mrb[80].mxu0 %vm3155_vm1, %v4015_v35 }
 0x5b1   : > { %6404 = vmatpush3.bf16.msra.mxu0 %v6675_v34  ;;  %6405 = vmatprep.mubr.msk.bf16.mxu0 %vm6863_vm0, %v6862_v3 }
 0x5b2   : > { %6415 = vmatprep.subr.bf16.mxu0 %v6862_v3 }
 0x5bc   : > { %v3808_v39 = vpop.f32.mrb[68].mxu1 }
 0x5bd   : > { %v3762_v40 = vpop.f32.mrb[68].mxu0  ;;  %v4165_v41 = vpack.c.bf16 %v3808_v39, %v3808_v39  ;;  %v6365_v45 = vpop.f32.mrb[69].mxu1 }
 0x5be   : > { %v4114_v47 = vpack.c.bf16 %v3762_v40, %v3762_v40  ;;  %v6359_v42 = vpop.f32.mrb[69].mxu0  ;;  %v3811_v50 = vpop.f32.mrb[70].mxu1 }
 0x5bf   : > { %v3765_v51 = vpop.f32.mrb[70].mxu0  ;;  %v6366_v43 = vpop.f32.mrb[71].mxu1  ;;  %6412 = vmatmul.mubr.msk.bf16.vlgmr.msra.gmra.mrb[84].mxu1 %vm3155_vm1, %v4165_v41 }
 0x5c0   : > { %v6360_v52 = vpop.f32.mrb[71].mxu0  ;;  %6406 = vmatmul.mubr.msk.bf16.vlgmr.msra.gmra.mrb[84].mxu0 %vm3155_vm1, %v4114_v47  ;;  %6422 = vmatpush3.bf16.msra.mxu1 %v6678_v44 }
 0x5c1   : > { %6416 = vmatpush3.bf16.msra.mxu0 %v6677_v46  ;;  %6417 = vmatprep.mubr.msk.bf16.mxu0 %vm6863_vm0, %v6862_v3  ;;  %v5435_v46 = vld [vmem:[%s8396_s6] ss:$0 sm:$0xff] }
 0x5c2   : > { %6423 = vmatprep.mubr.msk.bf16.mxu1 %vm6863_vm0, %v6862_v3  ;;  %6427 = vmatprep.subr.bf16.mxu0 %v6862_v3  ;;  %v6797_v52 = vld [vmem:[%s6989_s24] sm:$0xff] }
 0x5c3   : > { %6433 = vmatprep.subr.bf16.mxu1 %v6862_v3 }
 0x5dc   : > { %v3900_v53 = vpop.f32.mrb[72].mxu1 }
 0x5dd   : > { %v3854_v55 = vpop.f32.mrb[72].mxu0  ;;  %v4267_v58 = vpack.c.bf16 %v3900_v53, %v3900_v53  ;;  %v6377_v59 = vpop.f32.mrb[73].mxu1 }
 0x5de   : > { %v4216_v61 = vpack.c.bf16 %v3854_v55, %v3854_v55  ;;  %v6371_v62 = vpop.f32.mrb[73].mxu0  ;;  %v3903_v63 = vpop.f32.mrb[74].mxu1  ;;  %v6683_v55 = vld [vmem:[%s8399_s9 + $0x4] ss:$16 sps:$4 sm:$0xff]   ;;  %v6686_v59 = vld [vmem:[%s8399_s9 + $0xc] ss:$16 sps:$4 sm:$0xff]  }
 0x5df   : > { %v3857_v2 = vpop.f32.mrb[74].mxu0  ;;  %v6378_v0 = vpop.f32.mrb[75].mxu1  ;;  %6424 = vmatmul.mubr.msk.bf16.vlgmr.msra.gmra.mrb[88].mxu1 %vm3155_vm1, %v4267_v58  ;;  %v6684_v58 = vld [vmem:[%s8399_s9 + $0x8] ss:$16 sps:$4 sm:$0xff]   ;;  %v6687_v62 = vld [vmem:[%s8399_s9 + $0x20] ss:$16 sps:$4 sm:$0xff]  }
 0x5e0   : > { %v6372_v4 = vpop.f32.mrb[75].mxu0  ;;  %6418 = vmatmul.mubr.msk.bf16.vlgmr.msra.gmra.mrb[88].mxu0 %vm3155_vm1, %v4216_v61  ;;  %6434 = vmatpush3.bf16.msra.mxu1 %v6680_v54  ;;  %v6681_v54 = vld [vmem:[%s8399_s9] ss:$16 sps:$4 sm:$0xff]   ;;  %v6692_v61 = vld [vmem:[%s8399_s9 + $0x2c] ss:$16 sps:$4 sm:$0xff]  }
 0x5e1   : > { %6428 = vmatpush3.bf16.msra.mxu0 %v6679_v60  ;;  %6429 = vmatprep.mubr.msk.bf16.mxu0 %vm6863_vm0, %v6862_v3  ;;  %v6689_v60 = vld [vmem:[%s8399_s9 + $0x24] ss:$16 sps:$4 sm:$0xff]   ;;  %v6690_v63 = vld [vmem:[%s8399_s9 + $0x28] ss:$16 sps:$4 sm:$0xff]   ;;  %v6698_v0 = vld [vmem:[%s8399_s9 + $0x4c] ss:$16 sps:$4 sm:$0xff]  }
 0x5e2   : > { %6435 = vmatprep.mubr.msk.bf16.mxu1 %vm6863_vm0, %v6862_v3  ;;  %4671 = vmatprep.subr.bf16.mxu0 %v6683_v55  ;;  %v6695_v2 = vld [vmem:[%s8399_s9 + $0x44] ss:$16 sps:$4 sm:$0xff]   ;;  %v6693_v4 = vld [vmem:[%s8399_s9 + $0x40] ss:$16 sps:$4 sm:$0xff]  }
 0x5e3   : > { %4712 = vmatprep.subr.bf16.mxu1 %v6686_v59  ;;  %v6746_v55 = vld [vmem:[%s8401_s11 + $0xe0] sm:$0xff]  }
 0x5e4   : > { %v6748_v59 = vld [vmem:[%s8401_s11 + $0xa0] sm:$0xff]  }
 0x5fc   : > { %v3992_v5 = vpop.f32.mrb[76].mxu1 }
 0x5fd   : > { %v3946_v48 = vpop.f32.mrb[76].mxu0  ;;  %v4369_v49 = vpack.c.bf16 %v3992_v5, %v3992_v5  ;;  %v6389_v6 = vpop.f32.mrb[77].mxu1  ;;  %v6696_v5 = vld [vmem:[%s8399_s9 + $0x48] ss:$16 sps:$4 sm:$0xff]  }
 0x5fe   : > { %v4318_v7 = vpack.c.bf16 %v3946_v48, %v3946_v48  ;;  %v6383_v1 = vpop.f32.mrb[77].mxu0  ;;  %v3995_v9 = vpop.f32.mrb[78].mxu1 }
 0x5ff   : > { %v3949_v8 = vpop.f32.mrb[78].mxu0  ;;  %v6390_v10 = vpop.f32.mrb[79].mxu1  ;;  %6436 = vmatmul.mubr.msk.bf16.vlgmr.msra.gmra.mrb[92].mxu1 %vm3155_vm1, %v4369_v49  ;;  %v6701_v1 = vld [vmem:[%s8399_s9 + $0x64] ss:$16 sps:$4 sm:$0xff]   ;;  %v6704_v9 = vld [vmem:[%s8399_s9 + $0x6c] ss:$16 sps:$4 sm:$0xff]  }
 0x600   : > { %v6384_v11 = vpop.f32.mrb[79].mxu0  ;;  %6430 = vmatmul.mubr.msk.bf16.vlgmr.msra.gmra.mrb[92].mxu0 %vm3155_vm1, %v4318_v7  ;;  %4713 = vmatpush1.bf16.msra.mxu1 %v6684_v58  ;;  %v6699_v8 = vld [vmem:[%s8399_s9 + $0x60] ss:$16 sps:$4 sm:$0xff]   ;;  %v6702_v10 = vld [vmem:[%s8399_s9 + $0x68] ss:$16 sps:$4 sm:$0xff]  }
 0x601   : > { %4672 = vmatpush1.bf16.msra.mxu0 %v6681_v54  ;;  %4714 = vmatprep.subr.bf16.mxu1 %v6692_v61  ;;  %v6707_v11 = vld [vmem:[%s8399_s9 + $0x84] ss:$16 sps:$4 sm:$0xff]   ;;  %v6750_v61 = vld [vmem:[%s8401_s11 + $0xe8] sm:$0xff]  }
 0x602   : > { %4673 = vmatprep.subr.bf16.mxu0 %v6689_v60  ;;  %v6745_v54 = vld [vmem:[%s8401_s11 + $0x60] sm:$0xff]   ;;  %v6749_v60 = vld [vmem:[%s8401_s11 + $0x68] sm:$0xff]  }
 0x603   : > { %v6747_v58 = vld [vmem:[%s8401_s11 + $0x20] sm:$0xff]  }
 0x604   : > { %4715 = vmatpush1.bf16.msra.mxu1 %v6690_v63  ;;  %v6752_v63 = vld [vmem:[%s8401_s11 + $0xa8] sm:$0xff]  }
 0x605   : > { %4674 = vmatpush1.bf16.msra.mxu0 %v6687_v62  ;;  %4716 = vmatprep.subr.bf16.mxu1 %v6698_v0  ;;  %v6751_v62 = vld [vmem:[%s8401_s11 + $0x28] sm:$0xff]   ;;  %v6754_v0 = vld [vmem:[%s8401_s11 + $0xf0] sm:$0xff]  }
 0x606   : > { %4675 = vmatprep.subr.bf16.mxu0 %v6695_v2  ;;  %v6753_v2 = vld [vmem:[%s8401_s11 + $0x70] sm:$0xff]  }
 0x608   : > { %4717 = vmatpush1.bf16.msra.mxu1 %v6696_v5  ;;  %v6756_v5 = vld [vmem:[%s8401_s11 + $0xb0] sm:$0xff]  }
 0x609   : > { %4676 = vmatpush1.bf16.msra.mxu0 %v6693_v4  ;;  %4718 = vmatprep.subr.bf16.mxu1 %v6704_v9  ;;  %v6755_v4 = vld [vmem:[%s8401_s11 + $0x30] sm:$0xff]  }
 0x60a   : > { %4677 = vmatprep.subr.bf16.mxu0 %v6701_v1  ;;  %v4491_v1 = vlaneseq }
 0x60c   : > { %4719 = vmatpush1.bf16.msra.mxu1 %v6702_v10  ;;  %v4492_v9 = vshrl.u32 %v4491_v1, 7 }
 0x60d   : > { %4678 = vmatpush1.bf16.msra.mxu0 %v6699_v8 }
 0x60e   : > { %4679 = vmatprep.subr.bf16.mxu0 %v6707_v11  ;;  %v4493_v8 = vsub.s32 0, %v4492_v9  ;;  %v4501_v10 = vsub.s32 2, %v4492_v9  ;;  %v4489_v11 = vld [vmem:[%s8400_s10] sm:$0xf] }
 0x67f   : > { %v4108_v12 = vpop.f32.mrb[80].mxu1 }
 0x680   : > { %v6401_v13 = vpop.f32.mrb[81].mxu1 }
 0x681   : > { %v4111_v33 = vpop.f32.mrb[82].mxu1  ;;  %v6705_v13 = vld [vmem:[%s8399_s9 + $0x80] ss:$16 sps:$4 sm:$0xff]  }
 0x682   : > { %v6402_v14 = vpop.f32.mrb[83].mxu1  ;;  %v6708_v33 = vld [vmem:[%s8399_s9 + $0x88] ss:$16 sps:$4 sm:$0xff]   ;;  %4680 = vmatpush1.bf16.msra.mxu0 %v6705_v13  ;;  %v4505_v13 = vsub.s32 3, %v4492_v9 }
 0x683   : > { %v4059_v17 = vpop.f32.mrb[80].mxu0  ;;  %v6713_v14 = vld [vmem:[%s8399_s9 + $0xa4] ss:$16 sps:$4 sm:$0xff]  }
 0x684   : > { %v4109_v3 = vadd.f32 %v4108_v12, %v4059_v17  ;;  %v6395_v18 = vpop.f32.mrb[81].mxu0  ;;  %v6710_v12 = vld [vmem:[%s8399_s9 + $0x8c] ss:$16 sps:$4 sm:$0xff]   ;;  %4681 = vmatprep.subr.bf16.mxu0 %v6713_v14  ;;  %v4502_v14 = vrot.slane %v4489_v11, %v4501_v10 }
 0x685   : > { %v4062_v16 = vpop.f32.mrb[82].mxu0  ;;  %4720 = vmatprep.subr.bf16.mxu1 %v6710_v12  ;;  %v6716_v17 = vld [vmem:[%s8399_s9 + $0xac] ss:$16 sps:$4 sm:$0xff]   ;;  %v6714_v18 = vld [vmem:[%s8399_s9 + $0xa8] ss:$16 sps:$4 sm:$0xff]   ;;  %v4497_v12 = vsub.s32 1, %v4492_v9 }
 0x686   : > { %v6396_v56 = vpop.f32.mrb[83].mxu0  ;;  %4721 = vmatpush1.bf16.msra.mxu1 %v6708_v33  ;;  %v6719_v16 = vld [vmem:[%s8399_s9 + $0xc4] ss:$16 sps:$4 sm:$0xff]   ;;  %v4494_v33 = vrot.slane %v4489_v11, %v4493_v8 }
 0x687   : > { %4722 = vmatprep.subr.bf16.mxu1 %v6716_v17  ;;  %v6722_v56 = vld [vmem:[%s8399_s9 + $0xcc] ss:$16 sps:$4 sm:$0xff]   ;;  %v4498_v17 = vrot.slane %v4489_v11, %v4497_v12 }
 0x68a   : > { %4723 = vmatpush1.bf16.msra.mxu1 %v6714_v18 }
 0x68b   : > { %4724 = vmatprep.subr.bf16.mxu1 %v6722_v56 }
 0x692   : > { %v4209_v57 = vpop.f32.mrb[84].mxu1 }
 0x693   : > { %v4158_v19 = vpop.f32.mrb[84].mxu0  ;;  %v6413_v15 = vpop.f32.mrb[85].mxu1 }
 0x694   : > { %v4164_v20 = vadd.f32 %v4158_v19, %v4109_v3  ;;  %v6407_v21 = vpop.f32.mrb[85].mxu0  ;;  %v4212_v22 = vpop.f32.mrb[86].mxu1  ;;  %v6711_v3 = vld [vmem:[%s8399_s9 + $0xa0] ss:$16 sps:$4 sm:$0xff]   ;;  %v6720_v19 = vld [vmem:[%s8399_s9 + $0xc8] ss:$16 sps:$4 sm:$0xff]  }
 0x695   : > { %v4161_v27 = vpop.f32.mrb[86].mxu0  ;;  %v6414_v28 = vpop.f32.mrb[87].mxu1  ;;  %4682 = vmatpush1.bf16.msra.mxu0 %v6711_v3  ;;  %v6725_v15 = vld [vmem:[%s8399_s9 + $0xe4] ss:$16 sps:$4 sm:$0xff]   ;;  %4725 = vmatpush1.bf16.msra.mxu1 %v6720_v19  ;;  %v6723_v21 = vld [vmem:[%s8399_s9 + $0xe0] ss:$16 sps:$4 sm:$0xff]   ;;  %v4506_v3 = vrot.slane %v4489_v11, %v4505_v13 }
 0x696   : > { %v4215_v23 = vadd.f32 %v4209_v57, %v4164_v20  ;;  %v6408_v24 = vpop.f32.mrb[87].mxu0  ;;  %v6717_v57 = vld [vmem:[%s8399_s9 + $0xc0] ss:$16 sps:$4 sm:$0xff]   ;;  %4683 = vmatprep.subr.bf16.mxu0 %v6719_v16  ;;  %v6728_v20 = vld [vmem:[%s8399_s9 + $0xec] ss:$16 sps:$4 sm:$0xff]   ;;  %v6864_v27 = vmov 0  }
 0x697   : > { %v6726_v22 = vld [vmem:[%s8399_s9 + $0xe8] ss:$16 sps:$4 sm:$0xff]   ;;  %4726 = vmatprep.subr.bf16.mxu1 %v6728_v20  ;;  %4703 = vmatprep.mubr.bf16.mxu0 %v6864_v27  ;;  %v6729_v28 = vld [vmem:[%s8401_s11 + $0x40] sm:$0xff]  }
 0x698   : > { %4744 = vmatprep.mubr.bf16.mxu1 %v6864_v27 }
 0x699   : > { %4684 = vmatpush1.bf16.msra.mxu0 %v6717_v57  ;;  %4727 = vmatpush1.bf16.msra.mxu1 %v6726_v22 }
 0x69a   : > { %4685 = vmatprep.subr.bf16.mxu0 %v6725_v15 }
 0x69d   : > { %4686 = vmatpush1.bf16.msra.mxu0 %v6723_v21 }
 0x69e   : > { %5771 = vmatprep.subr.bf16.mxu0 %v6729_v28 }
 0x6b2   : > { %v4311_v25 = vpop.f32.mrb[88].mxu1 }
 0x6b3   : > { %v4260_v26 = vpop.f32.mrb[88].mxu0  ;;  %v6425_v29 = vpop.f32.mrb[89].mxu1 }
 0x6b4   : > { %v4266_v30 = vadd.f32 %v4260_v26, %v4215_v23  ;;  %v6419_v31 = vpop.f32.mrb[89].mxu0  ;;  %v4314_v32 = vpop.f32.mrb[90].mxu1  ;;  %v6730_v23 = vld [vmem:[%s8401_s11 + $0xc0] sm:$0xff]  }
 0x6b5   : > { %v4263_v34 = vpop.f32.mrb[90].mxu0  ;;  %v6426_v35 = vpop.f32.mrb[91].mxu1  ;;  %5793 = vmatprep.subr.bf16.mxu1 %v6730_v23  ;;  %v5437_v32 = vld [vmem:[%s8398_s8] ss:$0 sm:$0xff] }
 0x6b6   : > { %v4317_v36 = vadd.f32 %v4311_v25, %v4266_v30  ;;  %v6420_v37 = vpop.f32.mrb[91].mxu0  ;;  %v5436_v30 = vld [vmem:[%s8397_s7] ss:$0 sm:$0xff] }
 0x6b7   : > { %v6732_v37 = vld [vmem:[%s8401_s11 + $0x80] sm:$0xff]  }
 0x6d2   : > { %v4413_v38 = vpop.f32.mrb[92].mxu1 }
 0x6d3   : > { %v4362_v39 = vpop.f32.mrb[92].mxu0  ;;  %v6437_v44 = vpop.f32.mrb[93].mxu1 }
 0x6d4   : > { %v4368_v40 = vadd.f32 %v4362_v39, %v4317_v36  ;;  %v6431_v41 = vpop.f32.mrb[93].mxu0  ;;  %v4416_v45 = vpop.f32.mrb[94].mxu1  ;;  %v6731_v36 = vld [vmem:[%s8401_s11] sm:$0xff]   ;;  %v6733_v39 = vld [vmem:[%s8401_s11 + $0x48] sm:$0xff]  }
 0x6d5   : > { %v4365_v47 = vpop.f32.mrb[94].mxu0  ;;  %v6438_v42 = vpop.f32.mrb[95].mxu1  ;;  %v6734_v44 = vld [vmem:[%s8401_s11 + $0xc8] sm:$0xff]   ;;  %v6737_v45 = vld [vmem:[%s8401_s11 + $0x50] sm:$0xff]  }
 0x6d6   : > { %v4419_v50 = vadd.f32 %v4413_v38, %v4368_v40  ;;  %v6432_v51 = vpop.f32.mrb[95].mxu0  ;;  %v6735_v40 = vld [vmem:[%s8401_s11 + $0x8] sm:$0xff]   ;;  %v6739_v47 = vld [vmem:[%s8401_s11 + $0x10] sm:$0xff]  }
 0x6d7   : > { %v6736_v41 = vld [vmem:[%s8401_s11 + $0x88] sm:$0xff]   ;;  %v6740_v42 = vld [vmem:[%s8401_s11 + $0x90] sm:$0xff]   ;;  %v6742_v51 = vld [vmem:[%s8401_s11 + $0xd8] sm:$0xff]  }
 0x6d8   : > { %v4427_v43 = vadd.f32 %v5435_v46, %v4419_v50  ;;  %v6738_v46 = vld [vmem:[%s8401_s11 + $0xd0] sm:$0xff]   ;;  %v6741_v50 = vld [vmem:[%s8401_s11 + $0x58] sm:$0xff]  }
 0x6da   : > { %v8134_v53 = vadd.f32 %v6797_v52, %v4427_v43  ;;  %v6743_v43 = vld [vmem:[%s8401_s11 + $0x18] sm:$0xff]  }
 0x6db   : > { %v6744_v52 = vld [vmem:[%s8401_s11 + $0x98] sm:$0xff]  }
 0x6dc   : > { %4431 = vadd.xlane.f32.xlu0 %v8134_v53 }
 0x769   : > { %v4432_v48 = vpop.xlane.xlu0 %4431 }
 0x76a   : > { %v4433_v49 = vmul.f32 0.0078125, %v4432_v48  ;;  %v6757_v48 = vld [vmem:[%s8401_s11 + $0x78] sm:$0xff]  }
 0x76c   : > { %v4434_v6 = vsub.f32 %v8134_v53, %v4433_v49  ;;  %v6758_v49 = vld [vmem:[%s8401_s11 + $0xf8] sm:$0xff]  }
 0x76e   : > { %v4435_v7 = vmul.f32 %v4434_v6, %v4434_v6 }
 0x770   : > { %4436 = vadd.xlane.f32.xlu1 %v4435_v7  ;;  %v6760_v7 = vld [vmem:[%s8401_s11 + $0xb8] sm:$0xff]  }
 0x7fd   : > { %v4437_v24 = vpop.xlane.xlu1 %4436 }
 0x7fe   : > { %v4438_v25 = vmul.f32 0.0078125, %v4437_v24 }
 0x800   : > { %v4439_v26 = vadd.f32 1e-05, %v4438_v25 }
 0x802   : > { %6795 = vrsqrt.f32 %v4439_v26 }
 0x80c   : > { %v6796_v29 = vpop.eup %6795 }
 0x80d   : > { %v4441_v31 = vmul.f32 %v6796_v29, %v4434_v6  ;;  %v6759_v6 = vld [vmem:[%s8401_s11 + $0x38] sm:$0xff]  }
 0x80f   : > { %v4448_v34 = vmul.f32 %v5436_v30, %v4441_v31 }
 0x811   : > { %v4455_v35 = vadd.f32 %v5437_v32, %v4448_v34 }
 0x813   : > { %v4456_v38 = vpack.c.bf16 %v4455_v35, %v4455_v35 }
 0x815   : > { %4704 = vmatmul.mubr.bf16.vlgmr.msra.gmra.mrb[96].mxu0 %v4456_v38  ;;  %4745 = vmatmul.mubr.bf16.vlgmr.msra.gmra.mrb[96].mxu1 %v4456_v38 }
 0x816   : > { %5772 = vmatpush3.bf16.msra.mxu0 %v6731_v36  ;;  %5794 = vmatpush3.bf16.msra.mxu1 %v6732_v37  ;;  %v5470_v37 = vld [vmem:[%s8402_s12] ss:$0 sm:$0xff] }
 0x817   : > { %5773 = vmatprep.subr.bf16.mxu0 %v6733_v39  ;;  %5795 = vmatprep.subr.bf16.mxu1 %v6734_v44 }
 0x81a   : > { %5774 = vmatpush3.bf16.msra.mxu0 %v6735_v40  ;;  %5796 = vmatpush3.bf16.msra.mxu1 %v6736_v41 }
 0x81b   : > { %5775 = vmatprep.subr.bf16.mxu0 %v6737_v45  ;;  %5797 = vmatprep.subr.bf16.mxu1 %v6738_v46 }
 0x81e   : > { %5776 = vmatpush3.bf16.msra.mxu0 %v6739_v47  ;;  %5798 = vmatpush3.bf16.msra.mxu1 %v6740_v42 }
 0x81f   : > { %5777 = vmatprep.subr.bf16.mxu0 %v6741_v50  ;;  %5799 = vmatprep.subr.bf16.mxu1 %v6742_v51 }
 0x822   : > { %5778 = vmatpush3.bf16.msra.mxu0 %v6743_v43  ;;  %5800 = vmatpush3.bf16.msra.mxu1 %v6744_v52 }
 0x823   : > { %5779 = vmatprep.subr.bf16.mxu0 %v6745_v54  ;;  %5801 = vmatprep.subr.bf16.mxu1 %v6746_v55 }
 0x826   : > { %5780 = vmatpush3.bf16.msra.mxu0 %v6747_v58  ;;  %5802 = vmatpush3.bf16.msra.mxu1 %v6748_v59 }
 0x827   : > { %5781 = vmatprep.subr.bf16.mxu0 %v6749_v60  ;;  %5803 = vmatprep.subr.bf16.mxu1 %v6750_v61 }
 0x82a   : > { %5782 = vmatpush3.bf16.msra.mxu0 %v6751_v62  ;;  %5804 = vmatpush3.bf16.msra.mxu1 %v6752_v63 }
 0x82b   : > { %5783 = vmatprep.subr.bf16.mxu0 %v6753_v2  ;;  %5805 = vmatprep.subr.bf16.mxu1 %v6754_v0 }
 0x82e   : > { %5784 = vmatpush3.bf16.msra.mxu0 %v6755_v4  ;;  %5806 = vmatpush3.bf16.msra.mxu1 %v6756_v5 }
 0x82f   : > { %5785 = vmatprep.subr.bf16.mxu0 %v6757_v48  ;;  %5807 = vmatprep.subr.bf16.mxu1 %v6758_v49 }
 0x832   : > { %5786 = vmatpush3.bf16.msra.mxu0 %v6759_v6  ;;  %5808 = vmatpush3.bf16.msra.mxu1 %v6760_v7 }
 0x8e8   : > { %v4705_v18 = vpop.f32.mrb[96].mxu0  ;;  %v4746_v16 = vpop.f32.mrb[96].mxu1 }
 0x8e9   : > { %v4706_v56 = vadd.f32 %v4705_v18, %v4494_v33  ;;  %v4747_v57 = vadd.f32 %v4746_v16, %v4502_v14  ;;  %v4707_v19 = vpop.f32.mrb[97].mxu0  ;;  %v4748_v15 = vpop.f32.mrb[97].mxu1 }
 0x8ea   : > { %v4708_v20 = vadd.f32 %v4707_v19, %v4498_v17  ;;  %v4749_v21 = vadd.f32 %v4748_v15, %v4506_v3  ;;  %v4709_v22 = vpop.f32.mrb[98].mxu0  ;;  %v4750_v27 = vpop.f32.mrb[98].mxu1 }
 0x8eb   : > { %v4753_v28 = vmax.f32 %v4706_v56, 0.0  ;;  %v4755_v23 = vmax.f32 %v4747_v57, 0.0  ;;  %v4710_v24 = vpop.f32.mrb[99].mxu0  ;;  %v4751_v25 = vpop.f32.mrb[99].mxu1 }
 0x8ec   : > { %v4754_v26 = vmax.f32 %v4708_v20, 0.0  ;;  %v4756_v29 = vmax.f32 %v4749_v21, 0.0 }
 0x8ed   : > { %v4757_v32 = vpack.c.bf16 %v4753_v28, %v4753_v28  ;;  %v4759_v34 = vpack.c.bf16 %v4755_v23, %v4755_v23 }
 0x8ee   : > { %v4758_v30 = vpack.c.bf16 %v4754_v26, %v4754_v26  ;;  %v4760_v31 = vpack.c.bf16 %v4756_v29, %v4756_v29 }
 0x8f0   : > { %5056 = vmatprep.mubr.bf16.mxu0 %v4758_v30  ;;  %5096 = vmatprep.mubr.bf16.mxu1 %v4760_v31 }
 0x8f1   : > { %5057 = vmatmul.mubr.bf16.vlgmr.msra.gmra.mrb[100].mxu0 %v4757_v32  ;;  %5097 = vmatmul.mubr.bf16.vlgmr.msra.gmra.mrb[100].mxu1 %v4759_v34 }
 0x9c4   : > { %v5787_v35 = vpop.f32.mrb[100].mxu0  ;;  %v5809_v36 = vpop.f32.mrb[100].mxu1 }
 0x9c5   : > { %v5788_v38 = vpop.f32.mrb[101].mxu0  ;;  %v5810_v39 = vpop.f32.mrb[101].mxu1 }
 0x9c6   : > { %v5789_v44 = vadd.f32 %v5788_v38, %v5787_v35  ;;  %v5811_v40 = vadd.f32 %v5810_v39, %v5809_v36  ;;  %v5790_v41 = vpop.f32.mrb[102].mxu0  ;;  %v5812_v45 = vpop.f32.mrb[102].mxu1 }
 0x9c7   : > { %v5791_v46 = vpop.f32.mrb[103].mxu0  ;;  %v5813_v47 = vpop.f32.mrb[103].mxu1 }
 0x9c8   : > { %v5059_v42 = vadd.f32 %v5789_v44, %v5470_v37 }
 0x9ca   : > { %v5099_v50 = vadd.f32 %v5811_v40, %v5059_v42 }
 0x9cc   : > { %v5104_v51 = vadd.f32 %v5099_v50, %v8134_v53 }
 0x9ce   : > { %5105 = vst [vmem:[%s431_s20] sm:$0xff] %v5104_v51 }
 0x9cf   : > { %6811 = shalt.err (!%p6808_p3)
}
 0x9d0   : > { %s6812_s17 = scalar_lea.hbm %s8348_s22, 128  ;;  %s6816_s21 = scalar_lea.hbm %s8403_s13, 256 }
 0x9d1   : > { %p6813_p4 = scmp.ne.s32.totalorder %s8348_s22, %s6812_s17  ;;  %p6817_p9 = scmp.lt.u32.totalorder %s8348_s22, %s8403_s13 }
 0x9d2   : > { %p6818_p10 = scmp.lt.u32.totalorder %s6816_s21, %s6812_s17  ;;  %p6820_p12 = scmp.lt.u32.totalorder %s6812_s17, %s8348_s22 }
 0x9d3   : > { %p6814_p7 = pnand %p6813_p4, %p6974_p5 }
 0x9d4   : > { %p6819_p11 = por %p6818_p10, %p6817_p9 }
 0x9d5   : > { %p6815_p8 = pneg %p6814_p7 }
 0x9d6   : > { %p6821_p13 = por %p6820_p12, %p6819_p11 }
 0x9d8   : > { %p6822_p0 = pnand %p6821_p13, %p6815_p8 }
 0x9da   : > { %6825 = shalt.err (!%p6822_p0)
}
 0x9db   : > { %6439 = dma.vmem_to_hbm [thread:$0]  (%p6974_p5), %s8350_s1, 128, %s8348_s22, %s5107_s23  }
 0x9dc PF: > { %p6445_p1 = scmp.ge.s32.totalorder %s6860_s28, 2  ;;  %s5132_s15 = sand.u32 1, %s6848_s25  }
 0x9dd   : > { %s5133_s30 = scalar_lea.sflag [#allocation3], %s5132_s15 }
 0x9de   : > { %p6442_p2 = pnand %p6445_p1, %p6978_p6 }
 0x9e0   : > { %6843 = dma.done.wait (!%p6442_p2), %s5133_s30, 128  }
 0x9e1   : > { %6845 = vsyncadd (!%p6442_p2), %s5133_s30, 4294967168  ;;  %s8411_s16 = sld [smem:[#allocation5_spill]]  ;;  %p23_p3 = scmp.ge.s32.totalorder %s6961_s14, 4  }
 0x9e2   : > { %s8412_s25 = smov %s6852_s26  ;;  %s8413_s26 = smov %s6856_s27 }
 0x9e3   : > { %s8415_s28 = smov %s6961_s14  ;;  %25 = sbr.rel (!%p23_p3) target bundleno = 6 (0x6), region = 107 }
 0x9e7   : > { %s8414_s27 = smov %s8411_s16 }
 0x9ea   :  { %5138 = vsyncpa [#allocation3], 1 }
 0x9eb   :  { %5140 = vsyncpa [#allocation3 + $0x1], 1 }

</bundles_post_ra>
